<compile_context>
chip_gen: v5e
topology: v5e:2x2
jax: 0.10.0
libtpu: 0.0.40
codegen_flags: <defaults>
</compile_context>

<pallas_src>
import functools

import jax
import jax.numpy as jnp
from jax import lax
from jax.experimental import pallas as pl
from jax.experimental.pallas import tpu as pltpu


# ----------------------------------------------------------------------------
# Pallas kernels
# ----------------------------------------------------------------------------
def _conv_kernel(xc_ref, w_ref, b_ref, o_ref, *, pp: int):
    """Fused conv-as-matmul + bias + ReLU for one batch element.

    xc_ref: (1, PP, J, M) bf16   stride-phase patch slabs (J = s*s*C, M = OH*OW)
    w_ref : (PP, OC, J)   bf16   matching weight slabs
    b_ref : (OC, 1)       f32
    o_ref : (1, OC, M)    bf16   channel-major output (reshapes to NCHW)
    """
    xc = xc_ref[...]
    w = w_ref[...]
    acc = jnp.dot(w[0], xc[0, 0], preferred_element_type=jnp.float32)
    for t in range(1, pp):
        acc = acc + jnp.dot(w[t], xc[0, t], preferred_element_type=jnp.float32)
    acc = jnp.maximum(acc + b_ref[...], 0.0)
    o_ref[0] = acc.astype(o_ref.dtype)


def _fc_head_kernel(x_ref, w1_ref, b1_ref, w2_ref, b2_ref, o_ref):
    """Fused Linear(F, 512) + ReLU + Linear(512, A_pad) for one batch tile."""
    h = jnp.dot(x_ref[...], w1_ref[...], preferred_element_type=jnp.float32)
    h = jnp.maximum(h + b1_ref[...], 0.0)
    q = jnp.dot(h.astype(w2_ref.dtype), w2_ref[...],
                preferred_element_type=jnp.float32)
    o_ref[...] = (q + b2_ref[...]).astype(o_ref.dtype)


# ----------------------------------------------------------------------------
# Conv wrapper: stride-phase regrouping (no K*K blow-up) + Pallas matmul kernel
# ----------------------------------------------------------------------------
def _conv_out_shape(H, W, K, s):
    return (H - K) // s + 1, (W - K) // s + 1


def _build_phase_cols(x, K, s):
    """x: (B, C, H, W) -> (B, P*P, s*s*C, OH*OW), with P = K // s.

    Slab t = ph*P + pw holds rows ordered (rh, rw, c) and columns (oh, ow),
    where kh = ph*s + rh, kw = pw*s + rw.  This is an input-sized layout
    shuffle (XLA ops), not an im2col materialization.
    """
    B, C, H, W = x.shape
    # TODO(synk): generalize the phase decomposition to kernel sizes that are
    # not divisible by the stride (not needed for DQN's 8/4, 4/2, 3/1 layers).
    assert K % s == 0, "phase decomposition assumes kernel_size % stride == 0"
    P = K // s
    OH, OW = _conv_out_shape(H, W, K, s)
    Hq, Wq = OH + P - 1, OW + P - 1
    xd = x[:, :, : Hq * s, : Wq * s].reshape(B, C, Hq, s, Wq, s)
    cols = []
    for ph in range(P):
        for pw in range(P):
            blk = xd[:, :, ph:ph + OH, :, pw:pw + OW, :]   # (B, C, OH, s, OW, s)
            blk = blk.transpose(0, 3, 5, 1, 2, 4)          # (B, rh, rw, c, oh, ow)
            cols.append(blk.reshape(B, s * s * C, OH * OW))
    return jnp.stack(cols, axis=1), OH, OW                 # (B, P*P, J, M)


def conv_relu_pallas(x, w_cols, bias, *, K, s):
    """x: (B, C, H, W) bf16, w_cols: (P*P, OC, s*s*C) bf16, bias: (OC, 1) f32."""
    B = x.shape[0]
    xcols, OH, OW = _build_phase_cols(x, K, s)
    PP, J, M = xcols.shape[1:]
    OC = w_cols.shape[1]
    out = pl.pallas_call(
        functools.partial(_conv_kernel, pp=PP),
        out_shape=jax.ShapeDtypeStruct((B, OC, M), jnp.bfloat16),
        grid=(B,),
        in_specs=[
            pl.BlockSpec((1, PP, J, M), lambda b: (b, 0, 0, 0)),
            pl.BlockSpec((PP, OC, J), lambda b: (0, 0, 0)),   # resident weights
            pl.BlockSpec((OC, 1), lambda b: (0, 0)),
        ],
        out_specs=pl.BlockSpec((1, OC, M), lambda b: (b, 0, 0)),
        compiler_params=pltpu.CompilerParams(
            dimension_semantics=("parallel",)),
    )(xcols, w_cols, bias)
    return out.reshape(B, OC, OH, OW)                       # NCHW, like PyTorch


# ----------------------------------------------------------------------------
# Fused FC head: Linear(F, 512) + ReLU + Linear(512, A) in one pallas_call
# ----------------------------------------------------------------------------
def fc_head_pallas(feat, w1, b1, w2p, b2p, *, num_actions):
    """feat: (B, F) bf16; w1: (F, 512) bf16; w2p: (512, A_pad) bf16 (zero-pad)."""
    B, F = feat.shape
    H1 = w1.shape[1]
    AP = w2p.shape[1]
    TB = B if B <= 128 else 128           # batch tile (M-tiled, parallel grid)
    out = pl.pallas_call(
        _fc_head_kernel,
        out_shape=jax.ShapeDtypeStruct((B, AP), jnp.float32),
        grid=(pl.cdiv(B, TB),),
        in_specs=[
            pl.BlockSpec((TB, F), lambda i: (i, 0)),
            pl.BlockSpec((F, H1), lambda i: (0, 0)),
            pl.BlockSpec((1, H1), lambda i: (0, 0)),
            pl.BlockSpec((H1, AP), lambda i: (0, 0)),
            pl.BlockSpec((1, AP), lambda i: (0, 0)),
        ],
        out_specs=pl.BlockSpec((TB, AP), lambda i: (i, 0)),
        compiler_params=pltpu.CompilerParams(
            dimension_semantics=("parallel",)),
    )(feat, w1, b1, w2p, b2p)
    return out[:, :num_actions]


# ----------------------------------------------------------------------------
# Parameters: PyTorch-default init (PyTorch layout) + one-time kernel prep
# ----------------------------------------------------------------------------
def _feature_hw(H, W):
    h, w = _conv_out_shape(H, W, 8, 4)
    h, w = _conv_out_shape(h, w, 4, 2)
    h, w = _conv_out_shape(h, w, 3, 1)
    return h, w


def _uniform(key, shape, fan_in):
    bound = 1.0 / float(fan_in) ** 0.5
    return jax.random.uniform(key, shape, jnp.float32, -bound, bound)


def init_torch_params(key, in_channels, H, W, num_actions):
    """Parameters in PyTorch's native layouts (Conv2d OIHW, Linear (out, in))."""
    h3, w3 = _feature_hw(H, W)
    feature_size = 64 * h3 * w3
    ks = jax.random.split(key, 10)
    return {
        "conv1_w": _uniform(ks[0], (32, in_channels, 8, 8), in_channels * 64),
        "conv1_b": _uniform(ks[1], (32,), in_channels * 64),
        "conv2_w": _uniform(ks[2], (64, 32, 4, 4), 32 * 16),
        "conv2_b": _uniform(ks[3], (64,), 32 * 16),
        "conv3_w": _uniform(ks[4], (64, 64, 3, 3), 64 * 9),
        "conv3_b": _uniform(ks[5], (64,), 64 * 9),
        "fc1_w": _uniform(ks[6], (512, feature_size), feature_size),
        "fc1_b": _uniform(ks[7], (512,), feature_size),
        "fc2_w": _uniform(ks[8], (num_actions, 512), 512),
        "fc2_b": _uniform(ks[9], (num_actions,), 512),
    }


def _prep_conv_weight(w, s):
    """(OC, C, K, K) torch layout -> (P*P, OC, s*s*C) bf16 phase slabs."""
    OC, C, K, _ = w.shape
    assert K % s == 0
    P = K // s
    wt = w.transpose(0, 2, 3, 1)                  # (OC, kh, kw, c)
    wt = wt.reshape(OC, P, s, P, s, C)            # (OC, ph, rh, pw, rw, c)
    wt = wt.transpose(1, 3, 0, 2, 4, 5)           # (ph, pw, OC, rh, rw, c)
    return wt.reshape(P * P, OC, s * s * C).astype(jnp.bfloat16)


def prepare_params(tp, num_actions):
    """One-time conversion of PyTorch-layout params into kernel-friendly layouts."""
    a_pad = ((num_actions + 127) // 128) * 128
    fc2_wt = jnp.zeros((512, a_pad), jnp.float32).at[:, :num_actions].set(tp["fc2_w"].T)
    fc2_bp = jnp.zeros((1, a_pad), jnp.float32).at[:, :num_actions].set(tp["fc2_b"][None, :])
    return {
        "c1_w": _prep_conv_weight(tp["conv1_w"], 4), "c1_b": tp["conv1_b"].reshape(-1, 1),
        "c2_w": _prep_conv_weight(tp["conv2_w"], 2), "c2_b": tp["conv2_b"].reshape(-1, 1),
        "c3_w": _prep_conv_weight(tp["conv3_w"], 1), "c3_b": tp["conv3_b"].reshape(-1, 1),
        "fc1_w": tp["fc1_w"].T.astype(jnp.bfloat16),      # (F, 512), pre-transposed
        "fc1_b": tp["fc1_b"].reshape(1, -1),              # f32
        "fc2_w": fc2_wt.astype(jnp.bfloat16),             # (512, A_pad), zero-padded
        "fc2_b": fc2_bp,                                  # f32 (1, A_pad)
    }


# ----------------------------------------------------------------------------
# Forward pass == DQN_conv.forward
# ----------------------------------------------------------------------------
def dqn_forward(params, x, *, num_actions):
    x = x.astype(jnp.bfloat16)
    h = conv_relu_pallas(x, params["c1_w"], params["c1_b"], K=8, s=4)
    h = conv_relu_pallas(h, params["c2_w"], params["c2_b"], K=4, s=2)
    h = conv_relu_pallas(h, params["c3_w"], params["c3_b"], K=3, s=1)
    feat = h.reshape(x.shape[0], -1)      # == torch .view(B, -1): (c, h, w) order
    return fc_head_pallas(feat, params["fc1_w"], params["fc1_b"],
                          params["fc2_w"], params["fc2_b"],
                          num_actions=num_actions)


# ----------------------------------------------------------------------------
# Pure-JAX f32 reference (PyTorch semantics) for a correctness check
# ----------------------------------------------------------------------------
def reference_forward(tp, x):
    hi = lax.Precision.HIGHEST

    def conv(h, w, b, s):
        y = lax.conv_general_dilated(
            h, w, window_strides=(s, s), padding="VALID",
            dimension_numbers=("NCHW", "OIHW", "NCHW"), precision=hi)
        return jax.nn.relu(y + b.reshape(1, -1, 1, 1))

    h = conv(x, tp["conv1_w"], tp["conv1_b"], 4)
    h = conv(h, tp["conv2_w"], tp["conv2_b"], 2)
    h = conv(h, tp["conv3_w"], tp["conv3_b"], 1)
    f = h.reshape(x.shape[0], -1)
    f = jax.nn.relu(jnp.dot(f, tp["fc1_w"].T, precision=hi) + tp["fc1_b"])
    return jnp.dot(f, tp["fc2_w"].T, precision=hi) + tp["fc2_b"]


if __name__ == "__main__":
    # Small but valid shapes for the 3-conv stack: 44 -> 10 -> 4 -> 2.
    B, C, H, W = 2, 4, 44, 44
    num_actions = 6

    key = jax.random.PRNGKey(0)
    k_params, k_x = jax.random.split(key)
    torch_params = init_torch_params(k_params, C, H, W, num_actions)
    x = jax.random.normal(k_x, (B, C, H, W), jnp.float32)

    kernel_params = prepare_params(torch_params, num_actions)
    fwd = jax.jit(functools.partial(dqn_forward, num_actions=num_actions))
    q = fwd(kernel_params, x)
    jax.block_until_ready(q)

    assert q.shape == (B, num_actions)
    assert q.dtype == jnp.float32

    q_ref = jax.jit(reference_forward)(torch_params, x)
    err = float(jnp.max(jnp.abs(q - q_ref)))
    assert err < 2e-2, f"kernel output mismatch vs reference (max abs err {err})"
    print("KERNEL_OK")
</pallas_src>

<mosaic_0001>
module attributes {stable_mosaic.version = 11 : i64} {
  func.func @_conv_kernel(%arg0: i32, %arg1: memref<1x4x64x100xbf16, #tpu.memory_space<vmem>>, %arg2: memref<4x32x64xbf16, #tpu.memory_space<vmem>>, %arg3: memref<32x1xf32, #tpu.memory_space<vmem>>, %arg4: memref<1x32x100xbf16, #tpu.memory_space<vmem>>) attributes {dimension_semantics = [#tpu.dimension_semantics<parallel>], iteration_bounds = array<i64: 2>, scalar_prefetch = 0 : i64, scratch_operands = 0 : i64, tpu.core_type = #tpu.core_type<tc>, window_params = [{transform_indices = @transform_0, window_bounds = array<i64: 1, 4, 64, 100>}, {pipeline_mode = #tpu.pipeline_mode<synchronous>, transform_indices = @transform_1, window_bounds = array<i64: 4, 32, 64>}, {pipeline_mode = #tpu.pipeline_mode<synchronous>, transform_indices = @transform_2, window_bounds = array<i64: 32, 1>}, {transform_indices = @transform_3, window_bounds = array<i64: 1, 32, 100>}]} {
    %c0 = arith.constant 0 : index
    %c0_0 = arith.constant 0 : index
    %c0_1 = arith.constant 0 : index
    %c0_2 = arith.constant 0 : index
    %0 = vector.load %arg1[%c0, %c0_0, %c0_1, %c0_2] : memref<1x4x64x100xbf16, #tpu.memory_space<vmem>>, vector<1x4x64x100xbf16>
    %c0_3 = arith.constant 0 : index
    %c0_4 = arith.constant 0 : index
    %c0_5 = arith.constant 0 : index
    %1 = vector.load %arg2[%c0_3, %c0_4, %c0_5] : memref<4x32x64xbf16, #tpu.memory_space<vmem>>, vector<4x32x64xbf16>
    %2 = vector.extract_strided_slice %1 {offsets = [0, 0, 0], sizes = [1, 32, 64], strides = [1, 1, 1]} : vector<4x32x64xbf16> to vector<1x32x64xbf16>
    %3 = vector.shape_cast %2 : vector<1x32x64xbf16> to vector<32x64xbf16>
    %4 = vector.extract_strided_slice %0 {offsets = [0, 0, 0, 0], sizes = [1, 1, 64, 100], strides = [1, 1, 1, 1]} : vector<1x4x64x100xbf16> to vector<1x1x64x100xbf16>
    %5 = vector.shape_cast %4 : vector<1x1x64x100xbf16> to vector<64x100xbf16>
    %cst = arith.constant dense<0.000000e+00> : vector<32x100xf32>
    %6 = tpu.matmul %3, %5, %cst {dimension_numbers = #tpu.dot_dimension_numbers<[1], [0], [0], [1], [0, 0, 1, 1], [], []>} : vector<32x64xbf16>, vector<64x100xbf16>, vector<32x100xf32> -> vector<32x100xf32>
    %7 = vector.extract_strided_slice %1 {offsets = [1, 0, 0], sizes = [1, 32, 64], strides = [1, 1, 1]} : vector<4x32x64xbf16> to vector<1x32x64xbf16>
    %8 = vector.shape_cast %7 : vector<1x32x64xbf16> to vector<32x64xbf16>
    %9 = vector.extract_strided_slice %0 {offsets = [0, 1, 0, 0], sizes = [1, 1, 64, 100], strides = [1, 1, 1, 1]} : vector<1x4x64x100xbf16> to vector<1x1x64x100xbf16>
    %10 = vector.shape_cast %9 : vector<1x1x64x100xbf16> to vector<64x100xbf16>
    %cst_6 = arith.constant dense<0.000000e+00> : vector<32x100xf32>
    %11 = tpu.matmul %8, %10, %cst_6 {dimension_numbers = #tpu.dot_dimension_numbers<[1], [0], [0], [1], [0, 0, 1, 1], [], []>} : vector<32x64xbf16>, vector<64x100xbf16>, vector<32x100xf32> -> vector<32x100xf32>
    %12 = arith.addf %6, %11 : vector<32x100xf32>
    %13 = vector.extract_strided_slice %1 {offsets = [2, 0, 0], sizes = [1, 32, 64], strides = [1, 1, 1]} : vector<4x32x64xbf16> to vector<1x32x64xbf16>
    %14 = vector.shape_cast %13 : vector<1x32x64xbf16> to vector<32x64xbf16>
    %15 = vector.extract_strided_slice %0 {offsets = [0, 2, 0, 0], sizes = [1, 1, 64, 100], strides = [1, 1, 1, 1]} : vector<1x4x64x100xbf16> to vector<1x1x64x100xbf16>
    %16 = vector.shape_cast %15 : vector<1x1x64x100xbf16> to vector<64x100xbf16>
    %cst_7 = arith.constant dense<0.000000e+00> : vector<32x100xf32>
    %17 = tpu.matmul %14, %16, %cst_7 {dimension_numbers = #tpu.dot_dimension_numbers<[1], [0], [0], [1], [0, 0, 1, 1], [], []>} : vector<32x64xbf16>, vector<64x100xbf16>, vector<32x100xf32> -> vector<32x100xf32>
    %18 = arith.addf %12, %17 : vector<32x100xf32>
    %19 = vector.extract_strided_slice %1 {offsets = [3, 0, 0], sizes = [1, 32, 64], strides = [1, 1, 1]} : vector<4x32x64xbf16> to vector<1x32x64xbf16>
    %20 = vector.shape_cast %19 : vector<1x32x64xbf16> to vector<32x64xbf16>
    %21 = vector.extract_strided_slice %0 {offsets = [0, 3, 0, 0], sizes = [1, 1, 64, 100], strides = [1, 1, 1, 1]} : vector<1x4x64x100xbf16> to vector<1x1x64x100xbf16>
    %22 = vector.shape_cast %21 : vector<1x1x64x100xbf16> to vector<64x100xbf16>
    %cst_8 = arith.constant dense<0.000000e+00> : vector<32x100xf32>
    %23 = tpu.matmul %20, %22, %cst_8 {dimension_numbers = #tpu.dot_dimension_numbers<[1], [0], [0], [1], [0, 0, 1, 1], [], []>} : vector<32x64xbf16>, vector<64x100xbf16>, vector<32x100xf32> -> vector<32x100xf32>
    %24 = arith.addf %18, %23 : vector<32x100xf32>
    %c0_9 = arith.constant 0 : index
    %c0_10 = arith.constant 0 : index
    %25 = vector.load %arg3[%c0_9, %c0_10] : memref<32x1xf32, #tpu.memory_space<vmem>>, vector<32x1xf32>
    %26 = vector.broadcast %25 : vector<32x1xf32> to vector<32x100xf32>
    %27 = arith.addf %24, %26 : vector<32x100xf32>
    %cst_11 = arith.constant 0.000000e+00 : f32
    %28 = vector.broadcast %cst_11 : f32 to vector<32x100xf32>
    %29 = arith.maximumf %27, %28 : vector<32x100xf32>
    %30 = arith.truncf %29 : vector<32x100xf32> to vector<32x100xbf16>
    %c0_12 = arith.constant 0 : index
    %c0_13 = arith.constant 0 : index
    %c0_14 = arith.constant 0 : index
    %31 = vector.load %arg4[%c0_12, %c0_13, %c0_14] : memref<1x32x100xbf16, #tpu.memory_space<vmem>>, vector<1x32x100xbf16>
    %32 = vector.shape_cast %31 : vector<1x32x100xbf16> to vector<32x100xbf16>
    %33 = vector.shape_cast %30 : vector<32x100xbf16> to vector<1x32x100xbf16>
    tpu.vector_store %arg4[%c0_12, %c0_13, %c0_14], %33 {strides = array<i32>} : memref<1x32x100xbf16, #tpu.memory_space<vmem>>, vector<1x32x100xbf16>,
    return
  }
  func.func @transform_0(%arg0: i32) -> (i32, i32, i32, i32) {
    %c0_i32 = arith.constant 0 : i32
    %c0_i32_0 = arith.constant 0 : i32
    %c0_i32_1 = arith.constant 0 : i32
    %c0_i32_2 = arith.constant 0 : i32
    return %arg0, %c0_i32, %c0_i32_0, %c0_i32_1 : i32, i32, i32, i32
  }
  func.func @transform_1(%arg0: i32) -> (i32, i32, i32) {
    %c0_i32 = arith.constant 0 : i32
    %c0_i32_0 = arith.constant 0 : i32
    %c0_i32_1 = arith.constant 0 : i32
    %c0_i32_2 = arith.constant 0 : i32
    return %c0_i32, %c0_i32_0, %c0_i32_1 : i32, i32, i32
  }
  func.func @transform_2(%arg0: i32) -> (i32, i32) {
    %c0_i32 = arith.constant 0 : i32
    %c0_i32_0 = arith.constant 0 : i32
    %c0_i32_1 = arith.constant 0 : i32
    return %c0_i32, %c0_i32_0 : i32, i32
  }
  func.func @transform_3(%arg0: i32) -> (i32, i32, i32) {
    %c0_i32 = arith.constant 0 : i32
    %c0_i32_0 = arith.constant 0 : i32
    %c0_i32_1 = arith.constant 0 : i32
    return %arg0, %c0_i32, %c0_i32_0 : i32, i32, i32
  }
}

module attributes {stable_mosaic.version = 11 : i64} {
  func.func @_conv_kernel(%arg0: i32, %arg1: memref<1x4x128x16xbf16, #tpu.memory_space<vmem>>, %arg2: memref<4x64x128xbf16, #tpu.memory_space<vmem>>, %arg3: memref<64x1xf32, #tpu.memory_space<vmem>>, %arg4: memref<1x64x16xbf16, #tpu.memory_space<vmem>>) attributes {dimension_semantics = [#tpu.dimension_semantics<parallel>], iteration_bounds = array<i64: 2>, scalar_prefetch = 0 : i64, scratch_operands = 0 : i64, tpu.core_type = #tpu.core_type<tc>, window_params = [{transform_indices = @transform_0, window_bounds = array<i64: 1, 4, 128, 16>}, {pipeline_mode = #tpu.pipeline_mode<synchronous>, transform_indices = @transform_1, window_bounds = array<i64: 4, 64, 128>}, {pipeline_mode = #tpu.pipeline_mode<synchronous>, transform_indices = @transform_2, window_bounds = array<i64: 64, 1>}, {transform_indices = @transform_3, window_bounds = array<i64: 1, 64, 16>}]} {
    %c0 = arith.constant 0 : index
    %c0_0 = arith.constant 0 : index
    %c0_1 = arith.constant 0 : index
    %c0_2 = arith.constant 0 : index
    %0 = vector.load %arg1[%c0, %c0_0, %c0_1, %c0_2] : memref<1x4x128x16xbf16, #tpu.memory_space<vmem>>, vector<1x4x128x16xbf16>
    %c0_3 = arith.constant 0 : index
    %c0_4 = arith.constant 0 : index
    %c0_5 = arith.constant 0 : index
    %1 = vector.load %arg2[%c0_3, %c0_4, %c0_5] : memref<4x64x128xbf16, #tpu.memory_space<vmem>>, vector<4x64x128xbf16>
    %2 = vector.extract_strided_slice %1 {offsets = [0, 0, 0], sizes = [1, 64, 128], strides = [1, 1, 1]} : vector<4x64x128xbf16> to vector<1x64x128xbf16>
    %3 = vector.shape_cast %2 : vector<1x64x128xbf16> to vector<64x128xbf16>
    %4 = vector.extract_strided_slice %0 {offsets = [0, 0, 0, 0], sizes = [1, 1, 128, 16], strides = [1, 1, 1, 1]} : vector<1x4x128x16xbf16> to vector<1x1x128x16xbf16>
    %5 = vector.shape_cast %4 : vector<1x1x128x16xbf16> to vector<128x16xbf16>
    %cst = arith.constant dense<0.000000e+00> : vector<64x16xf32>
    %6 = tpu.matmul %3, %5, %cst {dimension_numbers = #tpu.dot_dimension_numbers<[1], [0], [0], [1], [0, 0, 1, 1], [], []>} : vector<64x128xbf16>, vector<128x16xbf16>, vector<64x16xf32> -> vector<64x16xf32>
    %7 = vector.extract_strided_slice %1 {offsets = [1, 0, 0], sizes = [1, 64, 128], strides = [1, 1, 1]} : vector<4x64x128xbf16> to vector<1x64x128xbf16>
    %8 = vector.shape_cast %7 : vector<1x64x128xbf16> to vector<64x128xbf16>
    %9 = vector.extract_strided_slice %0 {offsets = [0, 1, 0, 0], sizes = [1, 1, 128, 16], strides = [1, 1, 1, 1]} : vector<1x4x128x16xbf16> to vector<1x1x128x16xbf16>
    %10 = vector.shape_cast %9 : vector<1x1x128x16xbf16> to vector<128x16xbf16>
    %cst_6 = arith.constant dense<0.000000e+00> : vector<64x16xf32>
    %11 = tpu.matmul %8, %10, %cst_6 {dimension_numbers = #tpu.dot_dimension_numbers<[1], [0], [0], [1], [0, 0, 1, 1], [], []>} : vector<64x128xbf16>, vector<128x16xbf16>, vector<64x16xf32> -> vector<64x16xf32>
    %12 = arith.addf %6, %11 : vector<64x16xf32>
    %13 = vector.extract_strided_slice %1 {offsets = [2, 0, 0], sizes = [1, 64, 128], strides = [1, 1, 1]} : vector<4x64x128xbf16> to vector<1x64x128xbf16>
    %14 = vector.shape_cast %13 : vector<1x64x128xbf16> to vector<64x128xbf16>
    %15 = vector.extract_strided_slice %0 {offsets = [0, 2, 0, 0], sizes = [1, 1, 128, 16], strides = [1, 1, 1, 1]} : vector<1x4x128x16xbf16> to vector<1x1x128x16xbf16>
    %16 = vector.shape_cast %15 : vector<1x1x128x16xbf16> to vector<128x16xbf16>
    %cst_7 = arith.constant dense<0.000000e+00> : vector<64x16xf32>
    %17 = tpu.matmul %14, %16, %cst_7 {dimension_numbers = #tpu.dot_dimension_numbers<[1], [0], [0], [1], [0, 0, 1, 1], [], []>} : vector<64x128xbf16>, vector<128x16xbf16>, vector<64x16xf32> -> vector<64x16xf32>
    %18 = arith.addf %12, %17 : vector<64x16xf32>
    %19 = vector.extract_strided_slice %1 {offsets = [3, 0, 0], sizes = [1, 64, 128], strides = [1, 1, 1]} : vector<4x64x128xbf16> to vector<1x64x128xbf16>
    %20 = vector.shape_cast %19 : vector<1x64x128xbf16> to vector<64x128xbf16>
    %21 = vector.extract_strided_slice %0 {offsets = [0, 3, 0, 0], sizes = [1, 1, 128, 16], strides = [1, 1, 1, 1]} : vector<1x4x128x16xbf16> to vector<1x1x128x16xbf16>
    %22 = vector.shape_cast %21 : vector<1x1x128x16xbf16> to vector<128x16xbf16>
    %cst_8 = arith.constant dense<0.000000e+00> : vector<64x16xf32>
    %23 = tpu.matmul %20, %22, %cst_8 {dimension_numbers = #tpu.dot_dimension_numbers<[1], [0], [0], [1], [0, 0, 1, 1], [], []>} : vector<64x128xbf16>, vector<128x16xbf16>, vector<64x16xf32> -> vector<64x16xf32>
    %24 = arith.addf %18, %23 : vector<64x16xf32>
    %c0_9 = arith.constant 0 : index
    %c0_10 = arith.constant 0 : index
    %25 = vector.load %arg3[%c0_9, %c0_10] : memref<64x1xf32, #tpu.memory_space<vmem>>, vector<64x1xf32>
    %26 = vector.broadcast %25 : vector<64x1xf32> to vector<64x16xf32>
    %27 = arith.addf %24, %26 : vector<64x16xf32>
    %cst_11 = arith.constant 0.000000e+00 : f32
    %28 = vector.broadcast %cst_11 : f32 to vector<64x16xf32>
    %29 = arith.maximumf %27, %28 : vector<64x16xf32>
    %30 = arith.truncf %29 : vector<64x16xf32> to vector<64x16xbf16>
    %c0_12 = arith.constant 0 : index
    %c0_13 = arith.constant 0 : index
    %c0_14 = arith.constant 0 : index
    %31 = vector.load %arg4[%c0_12, %c0_13, %c0_14] : memref<1x64x16xbf16, #tpu.memory_space<vmem>>, vector<1x64x16xbf16>
    %32 = vector.shape_cast %31 : vector<1x64x16xbf16> to vector<64x16xbf16>
    %33 = vector.shape_cast %30 : vector<64x16xbf16> to vector<1x64x16xbf16>
    tpu.vector_store %arg4[%c0_12, %c0_13, %c0_14], %33 {strides = array<i32>} : memref<1x64x16xbf16, #tpu.memory_space<vmem>>, vector<1x64x16xbf16>,
    return
  }
  func.func @transform_0(%arg0: i32) -> (i32, i32, i32, i32) {
    %c0_i32 = arith.constant 0 : i32
    %c0_i32_0 = arith.constant 0 : i32
    %c0_i32_1 = arith.constant 0 : i32
    %c0_i32_2 = arith.constant 0 : i32
    return %arg0, %c0_i32, %c0_i32_0, %c0_i32_1 : i32, i32, i32, i32
  }
  func.func @transform_1(%arg0: i32) -> (i32, i32, i32) {
    %c0_i32 = arith.constant 0 : i32
    %c0_i32_0 = arith.constant 0 : i32
    %c0_i32_1 = arith.constant 0 : i32
    %c0_i32_2 = arith.constant 0 : i32
    return %c0_i32, %c0_i32_0, %c0_i32_1 : i32, i32, i32
  }
  func.func @transform_2(%arg0: i32) -> (i32, i32) {
    %c0_i32 = arith.constant 0 : i32
    %c0_i32_0 = arith.constant 0 : i32
    %c0_i32_1 = arith.constant 0 : i32
    return %c0_i32, %c0_i32_0 : i32, i32
  }
  func.func @transform_3(%arg0: i32) -> (i32, i32, i32) {
    %c0_i32 = arith.constant 0 : i32
    %c0_i32_0 = arith.constant 0 : i32
    %c0_i32_1 = arith.constant 0 : i32
    return %arg0, %c0_i32, %c0_i32_0 : i32, i32, i32
  }
}

module attributes {stable_mosaic.version = 11 : i64} {
  func.func @_conv_kernel(%arg0: i32, %arg1: memref<1x9x64x4xbf16, #tpu.memory_space<vmem>>, %arg2: memref<9x64x64xbf16, #tpu.memory_space<vmem>>, %arg3: memref<64x1xf32, #tpu.memory_space<vmem>>, %arg4: memref<1x64x4xbf16, #tpu.memory_space<vmem>>) attributes {dimension_semantics = [#tpu.dimension_semantics<parallel>], iteration_bounds = array<i64: 2>, scalar_prefetch = 0 : i64, scratch_operands = 0 : i64, tpu.core_type = #tpu.core_type<tc>, window_params = [{transform_indices = @transform_0, window_bounds = array<i64: 1, 9, 64, 4>}, {pipeline_mode = #tpu.pipeline_mode<synchronous>, transform_indices = @transform_1, window_bounds = array<i64: 9, 64, 64>}, {pipeline_mode = #tpu.pipeline_mode<synchronous>, transform_indices = @transform_2, window_bounds = array<i64: 64, 1>}, {transform_indices = @transform_3, window_bounds = array<i64: 1, 64, 4>}]} {
    %c0 = arith.constant 0 : index
    %c0_0 = arith.constant 0 : index
    %c0_1 = arith.constant 0 : index
    %c0_2 = arith.constant 0 : index
    %0 = vector.load %arg1[%c0, %c0_0, %c0_1, %c0_2] : memref<1x9x64x4xbf16, #tpu.memory_space<vmem>>, vector<1x9x64x4xbf16>
    %c0_3 = arith.constant 0 : index
    %c0_4 = arith.constant 0 : index
    %c0_5 = arith.constant 0 : index
    %1 = vector.load %arg2[%c0_3, %c0_4, %c0_5] : memref<9x64x64xbf16, #tpu.memory_space<vmem>>, vector<9x64x64xbf16>
    %2 = vector.extract_strided_slice %1 {offsets = [0, 0, 0], sizes = [1, 64, 64], strides = [1, 1, 1]} : vector<9x64x64xbf16> to vector<1x64x64xbf16>
    %3 = vector.shape_cast %2 : vector<1x64x64xbf16> to vector<64x64xbf16>
    %4 = vector.extract_strided_slice %0 {offsets = [0, 0, 0, 0], sizes = [1, 1, 64, 4], strides = [1, 1, 1, 1]} : vector<1x9x64x4xbf16> to vector<1x1x64x4xbf16>
    %5 = vector.shape_cast %4 : vector<1x1x64x4xbf16> to vector<64x4xbf16>
    %cst = arith.constant dense<0.000000e+00> : vector<64x4xf32>
    %6 = tpu.matmul %3, %5, %cst {dimension_numbers = #tpu.dot_dimension_numbers<[1], [0], [0], [1], [0, 0, 1, 1], [], []>} : vector<64x64xbf16>, vector<64x4xbf16>, vector<64x4xf32> -> vector<64x4xf32>
    %7 = vector.extract_strided_slice %1 {offsets = [1, 0, 0], sizes = [1, 64, 64], strides = [1, 1, 1]} : vector<9x64x64xbf16> to vector<1x64x64xbf16>
    %8 = vector.shape_cast %7 : vector<1x64x64xbf16> to vector<64x64xbf16>
    %9 = vector.extract_strided_slice %0 {offsets = [0, 1, 0, 0], sizes = [1, 1, 64, 4], strides = [1, 1, 1, 1]} : vector<1x9x64x4xbf16> to vector<1x1x64x4xbf16>
    %10 = vector.shape_cast %9 : vector<1x1x64x4xbf16> to vector<64x4xbf16>
    %cst_6 = arith.constant dense<0.000000e+00> : vector<64x4xf32>
    %11 = tpu.matmul %8, %10, %cst_6 {dimension_numbers = #tpu.dot_dimension_numbers<[1], [0], [0], [1], [0, 0, 1, 1], [], []>} : vector<64x64xbf16>, vector<64x4xbf16>, vector<64x4xf32> -> vector<64x4xf32>
    %12 = arith.addf %6, %11 : vector<64x4xf32>
    %13 = vector.extract_strided_slice %1 {offsets = [2, 0, 0], sizes = [1, 64, 64], strides = [1, 1, 1]} : vector<9x64x64xbf16> to vector<1x64x64xbf16>
    %14 = vector.shape_cast %13 : vector<1x64x64xbf16> to vector<64x64xbf16>
    %15 = vector.extract_strided_slice %0 {offsets = [0, 2, 0, 0], sizes = [1, 1, 64, 4], strides = [1, 1, 1, 1]} : vector<1x9x64x4xbf16> to vector<1x1x64x4xbf16>
    %16 = vector.shape_cast %15 : vector<1x1x64x4xbf16> to vector<64x4xbf16>
    %cst_7 = arith.constant dense<0.000000e+00> : vector<64x4xf32>
    %17 = tpu.matmul %14, %16, %cst_7 {dimension_numbers = #tpu.dot_dimension_numbers<[1], [0], [0], [1], [0, 0, 1, 1], [], []>} : vector<64x64xbf16>, vector<64x4xbf16>, vector<64x4xf32> -> vector<64x4xf32>
    %18 = arith.addf %12, %17 : vector<64x4xf32>
    %19 = vector.extract_strided_slice %1 {offsets = [3, 0, 0], sizes = [1, 64, 64], strides = [1, 1, 1]} : vector<9x64x64xbf16> to vector<1x64x64xbf16>
    %20 = vector.shape_cast %19 : vector<1x64x64xbf16> to vector<64x64xbf16>
    %21 = vector.extract_strided_slice %0 {offsets = [0, 3, 0, 0], sizes = [1, 1, 64, 4], strides = [1, 1, 1, 1]} : vector<1x9x64x4xbf16> to vector<1x1x64x4xbf16>
    %22 = vector.shape_cast %21 : vector<1x1x64x4xbf16> to vector<64x4xbf16>
    %cst_8 = arith.constant dense<0.000000e+00> : vector<64x4xf32>
    %23 = tpu.matmul %20, %22, %cst_8 {dimension_numbers = #tpu.dot_dimension_numbers<[1], [0], [0], [1], [0, 0, 1, 1], [], []>} : vector<64x64xbf16>, vector<64x4xbf16>, vector<64x4xf32> -> vector<64x4xf32>
    %24 = arith.addf %18, %23 : vector<64x4xf32>
    %25 = vector.extract_strided_slice %1 {offsets = [4, 0, 0], sizes = [1, 64, 64], strides = [1, 1, 1]} : vector<9x64x64xbf16> to vector<1x64x64xbf16>
    %26 = vector.shape_cast %25 : vector<1x64x64xbf16> to vector<64x64xbf16>
    %27 = vector.extract_strided_slice %0 {offsets = [0, 4, 0, 0], sizes = [1, 1, 64, 4], strides = [1, 1, 1, 1]} : vector<1x9x64x4xbf16> to vector<1x1x64x4xbf16>
    %28 = vector.shape_cast %27 : vector<1x1x64x4xbf16> to vector<64x4xbf16>
    %cst_9 = arith.constant dense<0.000000e+00> : vector<64x4xf32>
    %29 = tpu.matmul %26, %28, %cst_9 {dimension_numbers = #tpu.dot_dimension_numbers<[1], [0], [0], [1], [0, 0, 1, 1], [], []>} : vector<64x64xbf16>, vector<64x4xbf16>, vector<64x4xf32> -> vector<64x4xf32>
    %30 = arith.addf %24, %29 : vector<64x4xf32>
    %31 = vector.extract_strided_slice %1 {offsets = [5, 0, 0], sizes = [1, 64, 64], strides = [1, 1, 1]} : vector<9x64x64xbf16> to vector<1x64x64xbf16>
    %32 = vector.shape_cast %31 : vector<1x64x64xbf16> to vector<64x64xbf16>
    %33 = vector.extract_strided_slice %0 {offsets = [0, 5, 0, 0], sizes = [1, 1, 64, 4], strides = [1, 1, 1, 1]} : vector<1x9x64x4xbf16> to vector<1x1x64x4xbf16>
    %34 = vector.shape_cast %33 : vector<1x1x64x4xbf16> to vector<64x4xbf16>
    %cst_10 = arith.constant dense<0.000000e+00> : vector<64x4xf32>
    %35 = tpu.matmul %32, %34, %cst_10 {dimension_numbers = #tpu.dot_dimension_numbers<[1], [0], [0], [1], [0, 0, 1, 1], [], []>} : vector<64x64xbf16>, vector<64x4xbf16>, vector<64x4xf32> -> vector<64x4xf32>
    %36 = arith.addf %30, %35 : vector<64x4xf32>
    %37 = vector.extract_strided_slice %1 {offsets = [6, 0, 0], sizes = [1, 64, 64], strides = [1, 1, 1]} : vector<9x64x64xbf16> to vector<1x64x64xbf16>
    %38 = vector.shape_cast %37 : vector<1x64x64xbf16> to vector<64x64xbf16>
    %39 = vector.extract_strided_slice %0 {offsets = [0, 6, 0, 0], sizes = [1, 1, 64, 4], strides = [1, 1, 1, 1]} : vector<1x9x64x4xbf16> to vector<1x1x64x4xbf16>
    %40 = vector.shape_cast %39 : vector<1x1x64x4xbf16> to vector<64x4xbf16>
    %cst_11 = arith.constant dense<0.000000e+00> : vector<64x4xf32>
    %41 = tpu.matmul %38, %40, %cst_11 {dimension_numbers = #tpu.dot_dimension_numbers<[1], [0], [0], [1], [0, 0, 1, 1], [], []>} : vector<64x64xbf16>, vector<64x4xbf16>, vector<64x4xf32> -> vector<64x4xf32>
    %42 = arith.addf %36, %41 : vector<64x4xf32>
    %43 = vector.extract_strided_slice %1 {offsets = [7, 0, 0], sizes = [1, 64, 64], strides = [1, 1, 1]} : vector<9x64x64xbf16> to vector<1x64x64xbf16>
    %44 = vector.shape_cast %43 : vector<1x64x64xbf16> to vector<64x64xbf16>
    %45 = vector.extract_strided_slice %0 {offsets = [0, 7, 0, 0], sizes = [1, 1, 64, 4], strides = [1, 1, 1, 1]} : vector<1x9x64x4xbf16> to vector<1x1x64x4xbf16>
    %46 = vector.shape_cast %45 : vector<1x1x64x4xbf16> to vector<64x4xbf16>
    %cst_12 = arith.constant dense<0.000000e+00> : vector<64x4xf32>
    %47 = tpu.matmul %44, %46, %cst_12 {dimension_numbers = #tpu.dot_dimension_numbers<[1], [0], [0], [1], [0, 0, 1, 1], [], []>} : vector<64x64xbf16>, vector<64x4xbf16>, vector<64x4xf32> -> vector<64x4xf32>
    %48 = arith.addf %42, %47 : vector<64x4xf32>
    %49 = vector.extract_strided_slice %1 {offsets = [8, 0, 0], sizes = [1, 64, 64], strides = [1, 1, 1]} : vector<9x64x64xbf16> to vector<1x64x64xbf16>
    %50 = vector.shape_cast %49 : vector<1x64x64xbf16> to vector<64x64xbf16>
    %51 = vector.extract_strided_slice %0 {offsets = [0, 8, 0, 0], sizes = [1, 1, 64, 4], strides = [1, 1, 1, 1]} : vector<1x9x64x4xbf16> to vector<1x1x64x4xbf16>
    %52 = vector.shape_cast %51 : vector<1x1x64x4xbf16> to vector<64x4xbf16>
    %cst_13 = arith.constant dense<0.000000e+00> : vector<64x4xf32>
    %53 = tpu.matmul %50, %52, %cst_13 {dimension_numbers = #tpu.dot_dimension_numbers<[1], [0], [0], [1], [0, 0, 1, 1], [], []>} : vector<64x64xbf16>, vector<64x4xbf16>, vector<64x4xf32> -> vector<64x4xf32>
    %54 = arith.addf %48, %53 : vector<64x4xf32>
    %c0_14 = arith.constant 0 : index
    %c0_15 = arith.constant 0 : index
    %55 = vector.load %arg3[%c0_14, %c0_15] : memref<64x1xf32, #tpu.memory_space<vmem>>, vector<64x1xf32>
    %56 = vector.broadcast %55 : vector<64x1xf32> to vector<64x4xf32>
    %57 = arith.addf %54, %56 : vector<64x4xf32>
    %cst_16 = arith.constant 0.000000e+00 : f32
    %58 = vector.broadcast %cst_16 : f32 to vector<64x4xf32>
    %59 = arith.maximumf %57, %58 : vector<64x4xf32>
    %60 = arith.truncf %59 : vector<64x4xf32> to vector<64x4xbf16>
    %c0_17 = arith.constant 0 : index
    %c0_18 = arith.constant 0 : index
    %c0_19 = arith.constant 0 : index
    %61 = vector.load %arg4[%c0_17, %c0_18, %c0_19] : memref<1x64x4xbf16, #tpu.memory_space<vmem>>, vector<1x64x4xbf16>
    %62 = vector.shape_cast %61 : vector<1x64x4xbf16> to vector<64x4xbf16>
    %63 = vector.shape_cast %60 : vector<64x4xbf16> to vector<1x64x4xbf16>
    tpu.vector_store %arg4[%c0_17, %c0_18, %c0_19], %63 {strides = array<i32>} : memref<1x64x4xbf16, #tpu.memory_space<vmem>>, vector<1x64x4xbf16>,
    return
  }
  func.func @transform_0(%arg0: i32) -> (i32, i32, i32, i32) {
    %c0_i32 = arith.constant 0 : i32
    %c0_i32_0 = arith.constant 0 : i32
    %c0_i32_1 = arith.constant 0 : i32
    %c0_i32_2 = arith.constant 0 : i32
    return %arg0, %c0_i32, %c0_i32_0, %c0_i32_1 : i32, i32, i32, i32
  }
  func.func @transform_1(%arg0: i32) -> (i32, i32, i32) {
    %c0_i32 = arith.constant 0 : i32
    %c0_i32_0 = arith.constant 0 : i32
    %c0_i32_1 = arith.constant 0 : i32
    %c0_i32_2 = arith.constant 0 : i32
    return %c0_i32, %c0_i32_0, %c0_i32_1 : i32, i32, i32
  }
  func.func @transform_2(%arg0: i32) -> (i32, i32) {
    %c0_i32 = arith.constant 0 : i32
    %c0_i32_0 = arith.constant 0 : i32
    %c0_i32_1 = arith.constant 0 : i32
    return %c0_i32, %c0_i32_0 : i32, i32
  }
  func.func @transform_3(%arg0: i32) -> (i32, i32, i32) {
    %c0_i32 = arith.constant 0 : i32
    %c0_i32_0 = arith.constant 0 : i32
    %c0_i32_1 = arith.constant 0 : i32
    return %arg0, %c0_i32, %c0_i32_0 : i32, i32, i32
  }
}

module attributes {stable_mosaic.version = 11 : i64} {
  func.func @_fc_head_kernel(%arg0: i32, %arg1: memref<2x256xbf16, #tpu.memory_space<vmem>>, %arg2: memref<256x512xbf16, #tpu.memory_space<vmem>>, %arg3: memref<1x512xf32, #tpu.memory_space<vmem>>, %arg4: memref<512x128xbf16, #tpu.memory_space<vmem>>, %arg5: memref<1x128xf32, #tpu.memory_space<vmem>>, %arg6: memref<2x128xf32, #tpu.memory_space<vmem>>) attributes {dimension_semantics = [#tpu.dimension_semantics<parallel>], iteration_bounds = array<i64: 1>, scalar_prefetch = 0 : i64, scratch_operands = 0 : i64, tpu.core_type = #tpu.core_type<tc>, window_params = [{transform_indices = @transform_0, window_bounds = array<i64: 2, 256>}, {pipeline_mode = #tpu.pipeline_mode<synchronous>, transform_indices = @transform_1, window_bounds = array<i64: 256, 512>}, {pipeline_mode = #tpu.pipeline_mode<synchronous>, transform_indices = @transform_2, window_bounds = array<i64: 1, 512>}, {pipeline_mode = #tpu.pipeline_mode<synchronous>, transform_indices = @transform_3, window_bounds = array<i64: 512, 128>}, {pipeline_mode = #tpu.pipeline_mode<synchronous>, transform_indices = @transform_4, window_bounds = array<i64: 1, 128>}, {transform_indices = @transform_5, window_bounds = array<i64: 2, 128>}]} {
    %c0 = arith.constant 0 : index
    %c0_0 = arith.constant 0 : index
    %0 = vector.load %arg1[%c0, %c0_0] : memref<2x256xbf16, #tpu.memory_space<vmem>>, vector<2x256xbf16>
    %c0_1 = arith.constant 0 : index
    %c0_2 = arith.constant 0 : index
    %1 = vector.load %arg2[%c0_1, %c0_2] : memref<256x512xbf16, #tpu.memory_space<vmem>>, vector<256x512xbf16>
    %cst = arith.constant dense<0.000000e+00> : vector<2x512xf32>
    %2 = tpu.matmul %0, %1, %cst {dimension_numbers = #tpu.dot_dimension_numbers<[1], [0], [0], [1], [0, 0, 1, 1], [], []>} : vector<2x256xbf16>, vector<256x512xbf16>, vector<2x512xf32> -> vector<2x512xf32>
    %c0_3 = arith.constant 0 : index
    %c0_4 = arith.constant 0 : index
    %3 = vector.load %arg3[%c0_3, %c0_4] : memref<1x512xf32, #tpu.memory_space<vmem>>, vector<1x512xf32>
    %4 = vector.broadcast %3 : vector<1x512xf32> to vector<2x512xf32>
    %5 = arith.addf %2, %4 : vector<2x512xf32>
    %cst_5 = arith.constant 0.000000e+00 : f32
    %6 = vector.broadcast %cst_5 : f32 to vector<2x512xf32>
    %7 = arith.maximumf %5, %6 : vector<2x512xf32>
    %8 = arith.truncf %7 : vector<2x512xf32> to vector<2x512xbf16>
    %c0_6 = arith.constant 0 : index
    %c0_7 = arith.constant 0 : index
    %9 = vector.load %arg4[%c0_6, %c0_7] : memref<512x128xbf16, #tpu.memory_space<vmem>>, vector<512x128xbf16>
    %cst_8 = arith.constant dense<0.000000e+00> : vector<2x128xf32>
    %10 = tpu.matmul %8, %9, %cst_8 {dimension_numbers = #tpu.dot_dimension_numbers<[1], [0], [0], [1], [0, 0, 1, 1], [], []>} : vector<2x512xbf16>, vector<512x128xbf16>, vector<2x128xf32> -> vector<2x128xf32>
    %c0_9 = arith.constant 0 : index
    %c0_10 = arith.constant 0 : index
    %11 = vector.load %arg5[%c0_9, %c0_10] : memref<1x128xf32, #tpu.memory_space<vmem>>, vector<1x128xf32>
    %12 = vector.broadcast %11 : vector<1x128xf32> to vector<2x128xf32>
    %13 = arith.addf %10, %12 : vector<2x128xf32>
    %c0_11 = arith.constant 0 : index
    %c0_12 = arith.constant 0 : index
    %14 = vector.load %arg6[%c0_11, %c0_12] : memref<2x128xf32, #tpu.memory_space<vmem>>, vector<2x128xf32>
    tpu.vector_store %arg6[%c0_11, %c0_12], %13 {strides = array<i32>} : memref<2x128xf32, #tpu.memory_space<vmem>>, vector<2x128xf32>,
    return
  }
  func.func @transform_0(%arg0: i32) -> (i32, i32) {
    %c0_i32 = arith.constant 0 : i32
    %c0_i32_0 = arith.constant 0 : i32
    return %arg0, %c0_i32 : i32, i32
  }
  func.func @transform_1(%arg0: i32) -> (i32, i32) {
    %c0_i32 = arith.constant 0 : i32
    %c0_i32_0 = arith.constant 0 : i32
    %c0_i32_1 = arith.constant 0 : i32
    return %c0_i32, %c0_i32_0 : i32, i32
  }
  func.func @transform_2(%arg0: i32) -> (i32, i32) {
    %c0_i32 = arith.constant 0 : i32
    %c0_i32_0 = arith.constant 0 : i32
    %c0_i32_1 = arith.constant 0 : i32
    return %c0_i32, %c0_i32_0 : i32, i32
  }
  func.func @transform_3(%arg0: i32) -> (i32, i32) {
    %c0_i32 = arith.constant 0 : i32
    %c0_i32_0 = arith.constant 0 : i32
    %c0_i32_1 = arith.constant 0 : i32
    return %c0_i32, %c0_i32_0 : i32, i32
  }
  func.func @transform_4(%arg0: i32) -> (i32, i32) {
    %c0_i32 = arith.constant 0 : i32
    %c0_i32_0 = arith.constant 0 : i32
    %c0_i32_1 = arith.constant 0 : i32
    return %c0_i32, %c0_i32_0 : i32, i32
  }
  func.func @transform_5(%arg0: i32) -> (i32, i32) {
    %c0_i32 = arith.constant 0 : i32
    %c0_i32_0 = arith.constant 0 : i32
    return %arg0, %c0_i32 : i32, i32
  }
}

</mosaic_0001>

<bundles_post_ra>
// kernel: dqn_forward.4
= control target key start
LH: loop header
LB: loop body
LE: loop exit
PB: predicated region body
PF: predicated region fallthrough
CT: control target
= control target key end

     0   :  { %s742_s12 = smov 0   ;;  %s835_s0 = inlined_call_operand.vmem [shape: bf16[2,4,64,100], index: 0, kind: input, shape index: {}]   ;;  %s836_s1 = inlined_call_operand.vmem [shape: bf16[4,32,64], index: 1, kind: input, shape index: {}]   ;;  %s837_s2 = inlined_call_operand.vmem [shape: f32[32,1], index: 2, kind: input, shape index: {}]   ;;  %s838_s3 = inlined_call_operand.vmem [shape: bf16[2,32,100], index: 3, kind: output, shape index: {}]  }
   0x1 LB: > { %s561_s13 = sadd.s32 4294967295, %s719_s12   ;;  %p565_p0 = scmp.ge.s32.totalorder %s719_s12, 1  ;;  %s719_s12 = sphi %s742_s12, %s13_s12  }
   0x2   : > { %p137_p1 = scmp.lt.s32.totalorder %s719_s12, 3 }
   0x4   : > { %p138_p2 = pnand %p565_p0, %p137_p1 }
   0x5   : > { %p161_p3 = scmp.lt.s32.totalorder (!%p138_p2), %s561_s13, 1 }
   0x6   : > { %141 = sbr.rel (%p138_p2) target bundleno = 199 (0xc7), region = 32 }
   0xb   : > { %s840_s13 = smov (!%p161_p3, %s561_s13), 1  ;;  %v721_v8 = vmov 0   ;;  %v465_v11 = vld [vmem:[%s837_s2] sm:$0xff]  ;;  %v467_v12 = vld [vmem:[%s837_s2 + $0x10] sm:$0xff]  ;;  %v466_v21 = vld [vmem:[%s837_s2 + $0x8] sm:$0xff]  ;;  %vm254_vm0 = vcmask 523264  }
   0xc   : > { %s676_s14 = sshll.u32 %s840_s13, 7  ;;  %711 = vset.pattern.permute.xlu0 %v721_v8  ;;  %712 = vset.pattern.permute.xlu1 %v721_v8  ;;  %v696_v19 = vld [vmem:[%s836_s1 + $0x10] sm:$0xff]  ;;  %v694_v20 = vld [vmem:[%s836_s1] sm:$0xff]  ;;  %v468_v22 = vld [vmem:[%s837_s2 + $0x18] sm:$0xff]  ;;  %vm501_vm1 = vcmask 814080  }
   0xd   : > { %s756_s17 = scalar_lea.vmem %s835_s0, %s676_s14  ;;  %471 = vperm.xlu0 %711, %v465_v11   ;;  %481 = vperm.xlu1 %712, %v467_v12   ;;  %v698_v23 = vld [vmem:[%s836_s1 + $0x20] sm:$0xff]  ;;  %v700_v24 = vld [vmem:[%s836_s1 + $0x30] sm:$0xff]  ;;  %v697_v25 = vld [vmem:[%s836_s1 + $0x18] sm:$0xff] }
   0xe   : > { %v685_v0 = vld [vmem:[%s756_s17 + $0x38] sm:$0xff]  ;;  %v684_v4 = vld [vmem:[%s756_s17 + $0x30] sm:$0xff]  ;;  %v683_v9 = vld [vmem:[%s756_s17 + $0x28] sm:$0xff] }
   0xf   : > { %v681_v1 = vld [vmem:[%s756_s17 + $0x18] sm:$0xff]  ;;  %265 = vmatpush.bf16.msra.mxu0 %v685_v0  ;;  %v680_v5 = vld [vmem:[%s756_s17 + $0x10] sm:$0xff]  ;;  %v679_v10 = vld [vmem:[%s756_s17 + $0x8] sm:$0xff] }
  0x10   : > { %v689_v2 = vld [vmem:[%s756_s17 + $0x58] sm:$0xff]  ;;  %324 = vmatpush.bf16.msra.mxu1 %v681_v1  ;;  %v688_v6 = vld [vmem:[%s756_s17 + $0x50] sm:$0xff]  ;;  %v687_v13 = vld [vmem:[%s756_s17 + $0x48] sm:$0xff] }
  0x11   : > { %v693_v3 = vld [vmem:[%s756_s17 + $0x78] sm:$0xff]  ;;  %383 = vmatpush.bf16.msra.mxu2 %v689_v2  ;;  %v692_v7 = vld [vmem:[%s756_s17 + $0x70] sm:$0xff]  ;;  %v691_v14 = vld [vmem:[%s756_s17 + $0x68] sm:$0xff] }
  0x12   : > { %446 = vmatpush.bf16.msra.mxu3 %v693_v3  ;;  %v682_v15 = vld [vmem:[%s756_s17 + $0x20] sm:$0xff]  ;;  %v695_v26 = vld [vmem:[%s836_s1 + $0x8] sm:$0xff]  ;;  %v701_v28 = vld [vmem:[%s836_s1 + $0x38] sm:$0xff] }
  0x13   : > { %266 = vmatpush.bf16.msra.mxu0 %v684_v4  ;;  %v678_v16 = vld [vmem:[%s756_s17] sm:$0xff]  ;;  %v699_v27 = vld [vmem:[%s836_s1 + $0x28] sm:$0xff] }
  0x14   : > { %325 = vmatpush.bf16.msra.mxu1 %v680_v5  ;;  %v686_v17 = vld [vmem:[%s756_s17 + $0x40] sm:$0xff] }
  0x15   : > { %384 = vmatpush.bf16.msra.mxu2 %v688_v6  ;;  %v690_v18 = vld [vmem:[%s756_s17 + $0x60] sm:$0xff]  ;;  %476 = vperm.xlu0 %711, %v466_v21   ;;  %s677_s17 = sshll.u32 %s840_s13, 4 }
  0x16   : > { %447 = vmatpush.bf16.msra.mxu3 %v692_v7  ;;  %486 = vperm.xlu1 %712, %v468_v22   ;;  %s822_s20 = scalar_lea.vmem %s838_s3, %s677_s17 }
  0x17   : > { %267 = vmatpush.bf16.msra.mxu0 %v683_v9 }
  0x18   : > { %326 = vmatpush.bf16.msra.mxu1 %v679_v10 }
  0x19   : > { %385 = vmatpush.bf16.msra.mxu2 %v687_v13 }
  0x1a   : > { %448 = vmatpush.bf16.msra.mxu3 %v691_v14 }
  0x1b   : > { %268 = vmatpush.bf16.msra.mxu0 %v682_v15 }
  0x1c   : > { %327 = vmatpush.bf16.msra.mxu1 %v678_v16 }
  0x1d   : > { %386 = vmatpush.bf16.msra.mxu2 %v686_v17 }
  0x1e   : > { %449 = vmatpush.bf16.msra.mxu3 %v690_v18  ;;  %594 = vmatmul.msk.bf16.vlgmr.msra.gmra.mxu0 %vm254_vm0, %v696_v19 }
  0x1f   : > { %620 = vmatmul.msk.bf16.vlgmr.msra.gmra.mxu1 %vm254_vm0, %v694_v20 }
  0x20   : > { %646 = vmatmul.msk.bf16.vlgmr.msra.gmra.mxu2 %vm254_vm0, %v698_v23 }
  0x21   : > { %672 = vmatmul.msk.bf16.vlgmr.msra.gmra.mxu3 %vm254_vm0, %v700_v24 }
  0x2e   : > { %595 = vmatmul.msk.bf16.gmra.mxu0 %vm254_vm0, %v697_v25 }
  0x2f   : > { %621 = vmatmul.msk.bf16.gmra.mxu1 %vm254_vm0, %v695_v26 }
  0x30   : > { %647 = vmatmul.msk.bf16.gmra.mxu2 %vm254_vm0, %v699_v27 }
  0x31   : > { %673 = vmatmul.msk.bf16.gmra.mxu3 %vm254_vm0, %v701_v28 }
  0x7f   : > { %v472_v32 = vpop.permute.xlu0 %471  ;;  %v482_v57 = vpop.permute.xlu1 %481 }
  0x87   : > { %v477_v46 = vpop.permute.xlu0 %476 }
  0x88   : > { %v487_v5 = vpop.permute.xlu1 %486 }
  0x9b   : > { %v270_v29 = vpop.f32.mrf.mxu0 }
  0x9c   : > { %v329_v30 = vpop.f32.mrf.mxu1 }
  0x9d   : > { %v330_v31 = vadd.f32 %v329_v30, %v270_v29 }
  0xa3   : > { %v388_v33 = vpop.f32.mrf.mxu2  ;;  %v272_v36 = vpop.f32.mrf.mxu0 }
  0xa4   : > { %v451_v34 = vpop.f32.mrf.mxu3  ;;  %v398_v35 = vadd.f32 %v388_v33, %v330_v31  ;;  %v331_v37 = vpop.f32.mrf.mxu1 }
  0xa5   : > { %v332_v40 = vadd.f32 %v331_v37, %v272_v36 }
  0xa6   : > { %v461_v38 = vadd.f32 %v451_v34, %v398_v35 }
  0xa8   : > { %v489_v39 = vadd.f32 %v472_v32, %v461_v38 }
  0xaa   : > { %v493_v41 = vmax.f32 %v489_v39, 0.0 }
  0xab   : > { %v390_v42 = vpop.f32.mrf.mxu2  ;;  %v275_v47 = vpop.f32.mrf.mxu0 }
  0xac   : > { %v453_v43 = vpop.f32.mrf.mxu3  ;;  %v497_v44 = vpack.c.bf16 %v493_v41, %v493_v41  ;;  %v399_v45 = vadd.f32 %v390_v42, %v332_v40  ;;  %v334_v48 = vpop.f32.mrf.mxu1 }
  0xad   : > { %v335_v50 = vadd.f32 %v334_v48, %v275_v47 }
  0xae   : > { %502 = vst.msk [vmem:[%s822_s20] sm:$0xf] %vm501_vm1, %v497_v44  ;;  %v462_v49 = vadd.f32 %v453_v43, %v399_v45 }
  0xb0   : > { %v490_v51 = vadd.f32 %v477_v46, %v462_v49 }
  0xb2   : > { %v494_v52 = vmax.f32 %v490_v51, 0.0 }
  0xb3   : > { %v393_v53 = vpop.f32.mrf.mxu2  ;;  %v277_v59 = vpop.f32.mrf.mxu0 }
  0xb4   : > { %v456_v54 = vpop.f32.mrf.mxu3  ;;  %v498_v55 = vpack.c.bf16 %v494_v52, %v494_v52  ;;  %v400_v56 = vadd.f32 %v393_v53, %v335_v50  ;;  %v336_v60 = vpop.f32.mrf.mxu1 }
  0xb5   : > { %v337_v63 = vadd.f32 %v336_v60, %v277_v59 }
  0xb6   : > { %503 = vst.msk [vmem:[%s822_s20 + $0x4] sm:$0xf] %vm501_vm1, %v498_v55  ;;  %v463_v58 = vadd.f32 %v456_v54, %v400_v56 }
  0xb8   : > { %v491_v61 = vadd.f32 %v482_v57, %v463_v58 }
  0xba   : > { %v495_v62 = vmax.f32 %v491_v61, 0.0 }
  0xbb   : > { %v395_v0 = vpop.f32.mrf.mxu2 }
  0xbc   : > { %v499_v1 = vpack.c.bf16 %v495_v62, %v495_v62  ;;  %v401_v2 = vadd.f32 %v395_v0, %v337_v63  ;;  %v458_v3 = vpop.f32.mrf.mxu3 }
  0xbe   : > { %504 = vst.msk [vmem:[%s822_s20 + $0x8] sm:$0xf] %vm501_vm1, %v499_v1  ;;  %v464_v4 = vadd.f32 %v458_v3, %v401_v2 }
  0xc0   : > { %v492_v6 = vadd.f32 %v487_v5, %v464_v4 }
  0xc2   : > { %v496_v7 = vmax.f32 %v492_v6, 0.0 }
  0xc4   : > { %v500_v8 = vpack.c.bf16 %v496_v7, %v496_v7 }
  0xc6   : > { %505 = vst.msk [vmem:[%s822_s20 + $0xc] sm:$0xf] %vm501_vm1, %v500_v8 }
  0xc7 PF: > { %s13_s12 = sadd.s32 1, %s719_s12  }
  0xc8   : > { %p10_p4 = scmp.ge.s32.totalorder %s13_s12, 4  }
  0xca   :  { %12 = sbr.rel (!%p10_p4) target bundleno = 1 (0x1), region = 62 }

// kernel: dqn_forward.5
= control target key start
LH: loop header
LB: loop body
LE: loop exit
PB: predicated region body
PF: predicated region fallthrough
CT: control target
= control target key end

     0   :  { %s1117_s12 = smov 0   ;;  %s1262_s0 = inlined_call_operand.vmem [shape: bf16[2,4,128,16], index: 0, kind: input, shape index: {}]   ;;  %s1263_s1 = inlined_call_operand.vmem [shape: bf16[4,64,128], index: 1, kind: input, shape index: {}]   ;;  %s1264_s2 = inlined_call_operand.vmem [shape: f32[64,1], index: 2, kind: input, shape index: {}]   ;;  %s1265_s3 = inlined_call_operand.vmem [shape: bf16[2,64,16], index: 3, kind: output, shape index: {}]  }
   0x1 LB: > { %s823_s13 = sadd.s32 4294967295, %s1094_s12   ;;  %p827_p0 = scmp.ge.s32.totalorder %s1094_s12, 1  ;;  %s1094_s12 = sphi %s1117_s12, %s13_s12  }
   0x2   : > { %p137_p1 = scmp.lt.s32.totalorder %s1094_s12, 3 }
   0x4   : > { %p138_p2 = pnand %p827_p0, %p137_p1 }
   0x5   : > { %p161_p3 = scmp.lt.s32.totalorder (!%p138_p2), %s823_s13, 1 }
   0x6   : > { %141 = sbr.rel (%p138_p2) target bundleno = 247 (0xf7), region = 32 }
   0xb   : > { %s1267_s13 = smov (!%p161_p3, %s823_s13), 1  ;;  %v687_v22 = vld [vmem:[%s1264_s2] sm:$0xff]  ;;  %v1096_v25 = vmov 0   ;;  %v688_v32 = vld [vmem:[%s1264_s2 + $0x8] sm:$0xff]  ;;  %v689_v39 = vld [vmem:[%s1264_s2 + $0x10] sm:$0xff]  ;;  %vm759_vm0 = vcmask 125952  }
   0xc   : > { %s1026_s14 = sshll.u32 %s1267_s13, 8  ;;  %1085 = vset.pattern.permute.xlu0 %v1096_v25  ;;  %1086 = vset.pattern.permute.xlu1 %v1096_v25  ;;  %v1064_v35 = vld [vmem:[%s1263_s1 + $0x20] sm:$0xff]  ;;  %v690_v40 = vld [vmem:[%s1264_s2 + $0x18] sm:$0xff]  ;;  %v1065_v41 = vld [vmem:[%s1263_s1 + $0x28] sm:$0xff]  ;;  %s1027_s16 = sshll.u32 %s1267_s13, 5 }
   0xd   : > { %s1131_s17 = scalar_lea.vmem %s1262_s0, %s1026_s14  ;;  %697 = vperm.xlu0 %1085, %v687_v22   ;;  %1087 = vset.pattern.permute.xlu2 %v1096_v25  ;;  %v1060_v36 = vld [vmem:[%s1263_s1] sm:$0xff]  ;;  %v1061_v42 = vld [vmem:[%s1263_s1 + $0x8] sm:$0xff]  ;;  %v694_v45 = vld [vmem:[%s1264_s2 + $0x38] sm:$0xff]  ;;  %s1241_s19 = scalar_lea.vmem %s1265_s3, %s1027_s16 }
   0xe   : > { %v1043_v0 = vld [vmem:[%s1131_s17 + $0x78] sm:$0xff]  ;;  %v1042_v4 = vld [vmem:[%s1131_s17 + $0x70] sm:$0xff]  ;;  %v1041_v8 = vld [vmem:[%s1131_s17 + $0x68] sm:$0xff]  ;;  %707 = vperm.xlu1 %1086, %v689_v39  }
   0xf   : > { %v1035_v1 = vld [vmem:[%s1131_s17 + $0x38] sm:$0xff]  ;;  %339 = vmatpush.bf16.msra.mxu0 %v1043_v0  ;;  %v1034_v5 = vld [vmem:[%s1131_s17 + $0x30] sm:$0xff]  ;;  %v1033_v9 = vld [vmem:[%s1131_s17 + $0x28] sm:$0xff] }
  0x10   : > { %v1051_v2 = vld [vmem:[%s1131_s17 + $0xb8] sm:$0xff]  ;;  %440 = vmatpush.bf16.msra.mxu1 %v1035_v1  ;;  %v1050_v6 = vld [vmem:[%s1131_s17 + $0xb0] sm:$0xff]  ;;  %v1049_v10 = vld [vmem:[%s1131_s17 + $0xa8] sm:$0xff] }
  0x11   : > { %v1059_v3 = vld [vmem:[%s1131_s17 + $0xf8] sm:$0xff]  ;;  %541 = vmatpush.bf16.msra.mxu2 %v1051_v2  ;;  %v1058_v7 = vld [vmem:[%s1131_s17 + $0xf0] sm:$0xff]  ;;  %v1057_v11 = vld [vmem:[%s1131_s17 + $0xe8] sm:$0xff] }
  0x12   : > { %650 = vmatpush.bf16.msra.mxu3 %v1059_v3  ;;  %v1040_v12 = vld [vmem:[%s1131_s17 + $0x60] sm:$0xff]  ;;  %v1039_v16 = vld [vmem:[%s1131_s17 + $0x58] sm:$0xff]  ;;  %v1038_v20 = vld [vmem:[%s1131_s17 + $0x50] sm:$0xff] }
  0x13   : > { %340 = vmatpush.bf16.msra.mxu0 %v1042_v4  ;;  %v1032_v13 = vld [vmem:[%s1131_s17 + $0x20] sm:$0xff]  ;;  %v1031_v17 = vld [vmem:[%s1131_s17 + $0x18] sm:$0xff]  ;;  %v1030_v21 = vld [vmem:[%s1131_s17 + $0x10] sm:$0xff] }
  0x14   : > { %441 = vmatpush.bf16.msra.mxu1 %v1034_v5  ;;  %v1048_v14 = vld [vmem:[%s1131_s17 + $0xa0] sm:$0xff]  ;;  %v1047_v18 = vld [vmem:[%s1131_s17 + $0x98] sm:$0xff]  ;;  %v1046_v23 = vld [vmem:[%s1131_s17 + $0x90] sm:$0xff] }
  0x15   : > { %542 = vmatpush.bf16.msra.mxu2 %v1050_v6  ;;  %v1056_v15 = vld [vmem:[%s1131_s17 + $0xe0] sm:$0xff]  ;;  %v1055_v19 = vld [vmem:[%s1131_s17 + $0xd8] sm:$0xff]  ;;  %v1054_v24 = vld [vmem:[%s1131_s17 + $0xd0] sm:$0xff]  ;;  %702 = vperm.xlu0 %1085, %v688_v32  }
  0x16   : > { %651 = vmatpush.bf16.msra.mxu3 %v1058_v7  ;;  %v1037_v26 = vld [vmem:[%s1131_s17 + $0x48] sm:$0xff]  ;;  %v1036_v30 = vld [vmem:[%s1131_s17 + $0x40] sm:$0xff]  ;;  %712 = vperm.xlu1 %1086, %v690_v40   ;;  %v693_v46 = vld [vmem:[%s1264_s2 + $0x30] sm:$0xff] }
  0x17   : > { %341 = vmatpush.bf16.msra.mxu0 %v1041_v8  ;;  %v1029_v27 = vld [vmem:[%s1131_s17 + $0x8] sm:$0xff]  ;;  %v1028_v31 = vld [vmem:[%s1131_s17] sm:$0xff]  ;;  %v1066_v49 = vld [vmem:[%s1263_s1 + $0x30] sm:$0xff] }
  0x18   : > { %442 = vmatpush.bf16.msra.mxu1 %v1033_v9  ;;  %v1045_v28 = vld [vmem:[%s1131_s17 + $0x88] sm:$0xff]  ;;  %v1044_v33 = vld [vmem:[%s1131_s17 + $0x80] sm:$0xff]  ;;  %v1062_v50 = vld [vmem:[%s1263_s1 + $0x10] sm:$0xff] }
  0x19   : > { %543 = vmatpush.bf16.msra.mxu2 %v1049_v10  ;;  %v1053_v29 = vld [vmem:[%s1131_s17 + $0xc8] sm:$0xff]  ;;  %v1052_v34 = vld [vmem:[%s1131_s17 + $0xc0] sm:$0xff]  ;;  %v1070_v51 = vld [vmem:[%s1263_s1 + $0x50] sm:$0xff] }
  0x1a   : > { %652 = vmatpush.bf16.msra.mxu3 %v1057_v11  ;;  %v1068_v37 = vld [vmem:[%s1263_s1 + $0x40] sm:$0xff]  ;;  %v1069_v43 = vld [vmem:[%s1263_s1 + $0x48] sm:$0xff]  ;;  %v1074_v52 = vld [vmem:[%s1263_s1 + $0x70] sm:$0xff] }
  0x1b   : > { %342 = vmatpush.bf16.msra.mxu0 %v1040_v12  ;;  %v1072_v38 = vld [vmem:[%s1263_s1 + $0x60] sm:$0xff]  ;;  %v1073_v44 = vld [vmem:[%s1263_s1 + $0x68] sm:$0xff]  ;;  %v1067_v53 = vld [vmem:[%s1263_s1 + $0x38] sm:$0xff] }
  0x1c   : > { %443 = vmatpush.bf16.msra.mxu1 %v1032_v13  ;;  %v691_v47 = vld [vmem:[%s1264_s2 + $0x20] sm:$0xff]  ;;  %v692_v48 = vld [vmem:[%s1264_s2 + $0x28] sm:$0xff]  ;;  %v1063_v54 = vld [vmem:[%s1263_s1 + $0x18] sm:$0xff] }
  0x1d   : > { %544 = vmatpush.bf16.msra.mxu2 %v1048_v14  ;;  %727 = vperm.xlu0 %1085, %v693_v46   ;;  %v1071_v55 = vld [vmem:[%s1263_s1 + $0x58] sm:$0xff] }
  0x1e   : > { %653 = vmatpush.bf16.msra.mxu3 %v1056_v15  ;;  %732 = vperm.xlu1 %1086, %v694_v45   ;;  %v1075_v56 = vld [vmem:[%s1263_s1 + $0x78] sm:$0xff] }
  0x1f   : > { %343 = vmatpush.bf16.msra.mxu0 %v1039_v16  ;;  %717 = vperm.xlu2 %1087, %v691_v47  }
  0x20   : > { %444 = vmatpush.bf16.msra.mxu1 %v1031_v17 }
  0x21   : > { %545 = vmatpush.bf16.msra.mxu2 %v1047_v18 }
  0x22   : > { %654 = vmatpush.bf16.msra.mxu3 %v1055_v19 }
  0x23   : > { %344 = vmatpush.bf16.msra.mxu0 %v1038_v20 }
  0x24   : > { %445 = vmatpush.bf16.msra.mxu1 %v1030_v21 }
  0x25   : > { %546 = vmatpush.bf16.msra.mxu2 %v1046_v23 }
  0x26   : > { %655 = vmatpush.bf16.msra.mxu3 %v1054_v24 }
  0x27   : > { %345 = vmatpush.bf16.msra.mxu0 %v1037_v26  ;;  %722 = vperm.xlu2 %1087, %v692_v48  }
  0x28   : > { %446 = vmatpush.bf16.msra.mxu1 %v1029_v27 }
  0x29   : > { %547 = vmatpush.bf16.msra.mxu2 %v1045_v28 }
  0x2a   : > { %656 = vmatpush.bf16.msra.mxu3 %v1053_v29 }
  0x2b   : > { %346 = vmatpush.bf16.msra.mxu0 %v1036_v30 }
  0x2c   : > { %447 = vmatpush.bf16.msra.mxu1 %v1028_v31 }
  0x2d   : > { %548 = vmatpush.bf16.msra.mxu2 %v1044_v33 }
  0x2e   : > { %657 = vmatpush.bf16.msra.mxu3 %v1052_v34  ;;  %347 = vmatmul.bf16.vlgmr.msra.gmra.mxu0 %v1064_v35 }
  0x2f   : > { %448 = vmatmul.bf16.vlgmr.msra.gmra.mxu1 %v1060_v36 }
  0x30   : > { %549 = vmatmul.bf16.vlgmr.msra.gmra.mxu2 %v1068_v37 }
  0x31   : > { %658 = vmatmul.bf16.vlgmr.msra.gmra.mxu3 %v1072_v38 }
  0x3e   : > { %352 = vmatmul.bf16.gmra.mxu0 %v1065_v41 }
  0x3f   : > { %453 = vmatmul.bf16.gmra.mxu1 %v1061_v42 }
  0x40   : > { %554 = vmatmul.bf16.gmra.mxu2 %v1069_v43 }
  0x41   : > { %663 = vmatmul.bf16.gmra.mxu3 %v1073_v44 }
  0x4e   : > { %357 = vmatmul.bf16.gmra.mxu0 %v1066_v49 }
  0x4f   : > { %458 = vmatmul.bf16.gmra.mxu1 %v1062_v50 }
  0x50   : > { %559 = vmatmul.bf16.gmra.mxu2 %v1070_v51 }
  0x51   : > { %668 = vmatmul.bf16.gmra.mxu3 %v1074_v52 }
  0x5e   : > { %362 = vmatmul.bf16.gmra.mxu0 %v1067_v53 }
  0x5f   : > { %463 = vmatmul.bf16.gmra.mxu1 %v1063_v54 }
  0x60   : > { %564 = vmatmul.bf16.gmra.mxu2 %v1071_v55 }
  0x61   : > { %673 = vmatmul.bf16.gmra.mxu3 %v1075_v56 }
  0x79   : > { %v718_v39 = vpop.permute.xlu2 %717 }
  0x7f   : > { %v698_v60 = vpop.permute.xlu0 %697 }
  0x80   : > { %v708_v17 = vpop.permute.xlu1 %707 }
  0x81   : > { %v723_v54 = vpop.permute.xlu2 %722 }
  0x87   : > { %v703_v12 = vpop.permute.xlu0 %702 }
  0x88   : > { %v713_v34 = vpop.permute.xlu1 %712 }
  0xab   : > { %v348_v57 = vpop.f32.mrf.mxu0 }
  0xac   : > { %v449_v58 = vpop.f32.mrf.mxu1 }
  0xad   : > { %v450_v59 = vadd.f32 %v449_v58, %v348_v57 }
  0xb3   : > { %v550_v61 = vpop.f32.mrf.mxu2  ;;  %v350_v0 = vpop.f32.mrf.mxu0 }
  0xb4   : > { %v659_v62 = vpop.f32.mrf.mxu3  ;;  %v570_v63 = vadd.f32 %v550_v61, %v450_v59  ;;  %v451_v1 = vpop.f32.mrf.mxu1 }
  0xb5   : > { %v452_v4 = vadd.f32 %v451_v1, %v350_v0  ;;  %v728_v1 = vpop.permute.xlu0 %727 }
  0xb6   : > { %v679_v2 = vadd.f32 %v659_v62, %v570_v63 }
  0xb8   : > { %v735_v3 = vadd.f32 %v698_v60, %v679_v2 }
  0xba   : > { %v743_v5 = vmax.f32 %v735_v3, 0.0 }
  0xbb   : > { %v552_v6 = vpop.f32.mrf.mxu2  ;;  %v353_v10 = vpop.f32.mrf.mxu0 }
  0xbc   : > { %v661_v7 = vpop.f32.mrf.mxu3  ;;  %v751_v8 = vpack.c.bf16 %v743_v5, %v743_v5  ;;  %v571_v9 = vadd.f32 %v552_v6, %v452_v4  ;;  %v454_v11 = vpop.f32.mrf.mxu1 }
  0xbd   : > { %v455_v14 = vadd.f32 %v454_v11, %v353_v10 }
  0xbe   : > { %760 = vst.msk [vmem:[%s1241_s19] sm:$0xf] %vm759_vm0, %v751_v8  ;;  %v680_v13 = vadd.f32 %v661_v7, %v571_v9 }
  0xc0   : > { %v736_v15 = vadd.f32 %v703_v12, %v680_v13  ;;  %v733_v13 = vpop.permute.xlu1 %732 }
  0xc2   : > { %v744_v16 = vmax.f32 %v736_v15, 0.0 }
  0xc3   : > { %v555_v18 = vpop.f32.mrf.mxu2  ;;  %v355_v22 = vpop.f32.mrf.mxu0 }
  0xc4   : > { %v664_v19 = vpop.f32.mrf.mxu3  ;;  %v752_v20 = vpack.c.bf16 %v744_v16, %v744_v16  ;;  %v572_v21 = vadd.f32 %v555_v18, %v455_v14  ;;  %v456_v23 = vpop.f32.mrf.mxu1 }
  0xc5   : > { %v457_v26 = vadd.f32 %v456_v23, %v355_v22 }
  0xc6   : > { %761 = vst.msk [vmem:[%s1241_s19 + $0x4] sm:$0xf] %vm759_vm0, %v752_v20  ;;  %v681_v24 = vadd.f32 %v664_v19, %v572_v21 }
  0xc8   : > { %v737_v25 = vadd.f32 %v708_v17, %v681_v24 }
  0xca   : > { %v745_v27 = vmax.f32 %v737_v25, 0.0 }
  0xcb   : > { %v557_v28 = vpop.f32.mrf.mxu2  ;;  %v358_v32 = vpop.f32.mrf.mxu0 }
  0xcc   : > { %v666_v29 = vpop.f32.mrf.mxu3  ;;  %v753_v30 = vpack.c.bf16 %v745_v27, %v745_v27  ;;  %v573_v31 = vadd.f32 %v557_v28, %v457_v26  ;;  %v459_v33 = vpop.f32.mrf.mxu1 }
  0xcd   : > { %v460_v36 = vadd.f32 %v459_v33, %v358_v32 }
  0xce   : > { %762 = vst.msk [vmem:[%s1241_s19 + $0x8] sm:$0xf] %vm759_vm0, %v753_v30  ;;  %v682_v35 = vadd.f32 %v666_v29, %v573_v31 }
  0xd0   : > { %v738_v37 = vadd.f32 %v713_v34, %v682_v35 }
  0xd2   : > { %v746_v38 = vmax.f32 %v738_v37, 0.0 }
  0xd3   : > { %v560_v40 = vpop.f32.mrf.mxu2  ;;  %v360_v44 = vpop.f32.mrf.mxu0 }
  0xd4   : > { %v669_v41 = vpop.f32.mrf.mxu3  ;;  %v754_v42 = vpack.c.bf16 %v746_v38, %v746_v38  ;;  %v574_v43 = vadd.f32 %v560_v40, %v460_v36  ;;  %v461_v45 = vpop.f32.mrf.mxu1 }
  0xd5   : > { %v462_v48 = vadd.f32 %v461_v45, %v360_v44 }
  0xd6   : > { %763 = vst.msk [vmem:[%s1241_s19 + $0xc] sm:$0xf] %vm759_vm0, %v754_v42  ;;  %v683_v46 = vadd.f32 %v669_v41, %v574_v43 }
  0xd8   : > { %v739_v47 = vadd.f32 %v718_v39, %v683_v46 }
  0xda   : > { %v747_v49 = vmax.f32 %v739_v47, 0.0 }
  0xdb   : > { %v562_v50 = vpop.f32.mrf.mxu2  ;;  %v363_v55 = vpop.f32.mrf.mxu0 }
  0xdc   : > { %v671_v51 = vpop.f32.mrf.mxu3  ;;  %v755_v52 = vpack.c.bf16 %v747_v49, %v747_v49  ;;  %v575_v53 = vadd.f32 %v562_v50, %v462_v48  ;;  %v464_v56 = vpop.f32.mrf.mxu1 }
  0xdd   : > { %v465_v58 = vadd.f32 %v464_v56, %v363_v55 }
  0xde   : > { %764 = vst.msk [vmem:[%s1241_s19 + $0x10] sm:$0xf] %vm759_vm0, %v755_v52  ;;  %v684_v57 = vadd.f32 %v671_v51, %v575_v53 }
  0xe0   : > { %v740_v59 = vadd.f32 %v723_v54, %v684_v57 }
  0xe2   : > { %v748_v60 = vmax.f32 %v740_v59, 0.0 }
  0xe3   : > { %v565_v61 = vpop.f32.mrf.mxu2  ;;  %v365_v3 = vpop.f32.mrf.mxu0 }
  0xe4   : > { %v674_v62 = vpop.f32.mrf.mxu3  ;;  %v756_v63 = vpack.c.bf16 %v748_v60, %v748_v60  ;;  %v576_v0 = vadd.f32 %v565_v61, %v465_v58  ;;  %v466_v4 = vpop.f32.mrf.mxu1 }
  0xe5   : > { %v467_v7 = vadd.f32 %v466_v4, %v365_v3 }
  0xe6   : > { %765 = vst.msk [vmem:[%s1241_s19 + $0x14] sm:$0xf] %vm759_vm0, %v756_v63  ;;  %v685_v2 = vadd.f32 %v674_v62, %v576_v0 }
  0xe8   : > { %v741_v5 = vadd.f32 %v728_v1, %v685_v2 }
  0xea   : > { %v749_v6 = vmax.f32 %v741_v5, 0.0 }
  0xeb   : > { %v567_v8 = vpop.f32.mrf.mxu2 }
  0xec   : > { %v757_v9 = vpack.c.bf16 %v749_v6, %v749_v6  ;;  %v577_v10 = vadd.f32 %v567_v8, %v467_v7  ;;  %v676_v11 = vpop.f32.mrf.mxu3 }
  0xee   : > { %766 = vst.msk [vmem:[%s1241_s19 + $0x18] sm:$0xf] %vm759_vm0, %v757_v9  ;;  %v686_v12 = vadd.f32 %v676_v11, %v577_v10 }
  0xf0   : > { %v742_v14 = vadd.f32 %v733_v13, %v686_v12 }
  0xf2   : > { %v750_v15 = vmax.f32 %v742_v14, 0.0 }
  0xf4   : > { %v758_v16 = vpack.c.bf16 %v750_v15, %v750_v15 }
  0xf6   : > { %767 = vst.msk [vmem:[%s1241_s19 + $0x1c] sm:$0xf] %vm759_vm0, %v758_v16 }
  0xf7 PF: > { %s13_s12 = sadd.s32 1, %s1094_s12  }
  0xf8   : > { %p10_p4 = scmp.ge.s32.totalorder %s13_s12, 4  }
  0xfa   :  { %12 = sbr.rel (!%p10_p4) target bundleno = 1 (0x1), region = 62 }

// kernel: dqn_forward.6
= control target key start
LH: loop header
LB: loop body
LE: loop exit
PB: predicated region body
PF: predicated region fallthrough
CT: control target
= control target key end

     0   :  { %s1735_s12 = smov 0   ;;  %s2049_s0 = inlined_call_operand.vmem [shape: bf16[2,9,64,4], index: 0, kind: input, shape index: {}]   ;;  %s2050_s1 = inlined_call_operand.vmem [shape: bf16[9,64,64], index: 1, kind: input, shape index: {}]   ;;  %s2051_s2 = inlined_call_operand.vmem [shape: f32[64,1], index: 2, kind: input, shape index: {}]   ;;  %s2052_s3 = inlined_call_operand.vmem [shape: bf16[2,64,4], index: 3, kind: output, shape index: {}]  }
   0x1 LB: > { %s1274_s13 = sadd.s32 4294967295, %s1712_s12   ;;  %p1278_p0 = scmp.ge.s32.totalorder %s1712_s12, 1  ;;  %s1712_s12 = sphi %s1735_s12, %s13_s12  }
   0x2   : > { %p137_p1 = scmp.lt.s32.totalorder %s1712_s12, 3 }
   0x4   : > { %p138_p2 = pnand %p1278_p0, %p137_p1 }
   0x5   : > { %p161_p3 = scmp.lt.s32.totalorder (!%p138_p2), %s1274_s13, 1 }
   0x6   : > { %141 = sbr.rel (%p138_p2) target bundleno = 312 (0x138), region = 32 }
   0xb   : > { %s2054_s13 = smov (!%p161_p3, %s1274_s13), 1  ;;  %v1650_v6 = vld [vmem:[%s2050_s1 + $0x28] sm:$0xff]  ;;  %v1651_v7 = vld [vmem:[%s2050_s1 + $0x30] sm:$0xff]  ;;  %vm360_vm0 = vcmask 523264   ;;  %v1652_v8 = vld [vmem:[%s2050_s1 + $0x38] sm:$0xff]  ;;  %v1714_v57 = vmov 0  }
   0xc   : > { %s1693_s14 = smul.u32 288, %s2054_s13  ;;  %v1649_v9 = vld [vmem:[%s2050_s1 + $0x20] sm:$0xff]  ;;  %v1646_v40 = vld [vmem:[%s2050_s1 + $0x8] sm:$0xff]  ;;  %v1647_v48 = vld [vmem:[%s2050_s1 + $0x10] sm:$0xff]  ;;  %1703 = vset.pattern.permute.xlu0 %v1714_v57  ;;  %1704 = vset.pattern.permute.xlu1 %v1714_v57  ;;  %s1608_s4 = sshll.u32 %s2054_s13, 5  ;;  %vm1210_vm1 = vcmask 27648  }
   0xd   : > { %v1645_v28 = vld [vmem:[%s2050_s1] sm:$0xff]  ;;  %v1654_v41 = vld [vmem:[%s2050_s1 + $0x48] sm:$0xff]  ;;  %v1655_v49 = vld [vmem:[%s2050_s1 + $0x50] sm:$0xff]  ;;  %1705 = vset.pattern.permute.xlu2 %v1714_v57  ;;  %s2006_s7 = scalar_lea.vmem %s2052_s3, %s1608_s4 }
   0xe   : > { %s1749_s17 = scalar_lea.vmem %s2049_s0, %s1693_s14  ;;  %v1653_v29 = vld [vmem:[%s2050_s1 + $0x40] sm:$0xff]  ;;  %v1658_v42 = vld [vmem:[%s2050_s1 + $0x68] sm:$0xff]  ;;  %v1659_v50 = vld [vmem:[%s2050_s1 + $0x70] sm:$0xff] }
   0xf   : > { %v1616_v0 = vld [vmem:[%s1749_s17 + $0x38] sm:$0xff]  ;;  %v1615_v1 = vld [vmem:[%s1749_s17 + $0x30] sm:$0xff]  ;;  %v1614_v2 = vld [vmem:[%s1749_s17 + $0x28] sm:$0xff] }
  0x10   : > { %1681 = vmatpush.bf16.msra.mxu1 %v1616_v0  ;;  %1682 = vmatpush.bf16.msra.mxu2 %v1616_v0  ;;  %v1613_v3 = vld [vmem:[%s1749_s17 + $0x20] sm:$0xff]  ;;  %v1620_v4 = vld [vmem:[%s1749_s17 + $0x58] sm:$0xff]  ;;  %v1619_v12 = vld [vmem:[%s1749_s17 + $0x50] sm:$0xff] }
  0x11   : > { %1683 = vmatpush.bf16.msra.mxu3 %v1616_v0  ;;  %377 = vmatpush.bf16.msra.mxu0 %v1616_v0  ;;  %v1612_v5 = vld [vmem:[%s1749_s17 + $0x18] sm:$0xff]  ;;  %v1611_v13 = vld [vmem:[%s1749_s17 + $0x10] sm:$0xff]  ;;  %v1618_v16 = vld [vmem:[%s1749_s17 + $0x48] sm:$0xff] }
  0x12   : > { %v1624_v10 = vld [vmem:[%s1749_s17 + $0x78] sm:$0xff]  ;;  %v1623_v14 = vld [vmem:[%s1749_s17 + $0x70] sm:$0xff]  ;;  %v1610_v17 = vld [vmem:[%s1749_s17 + $0x8] sm:$0xff] }
  0x13   : > { %v1628_v11 = vld [vmem:[%s1749_s17 + $0x98] sm:$0xff]  ;;  %v1627_v15 = vld [vmem:[%s1749_s17 + $0x90] sm:$0xff]  ;;  %v1622_v18 = vld [vmem:[%s1749_s17 + $0x68] sm:$0xff] }
  0x14   : > { %1684 = vmatpush.bf16.msra.mxu1 %v1615_v1  ;;  %1685 = vmatpush.bf16.msra.mxu2 %v1615_v1  ;;  %v1626_v19 = vld [vmem:[%s1749_s17 + $0x88] sm:$0xff]  ;;  %v1617_v20 = vld [vmem:[%s1749_s17 + $0x40] sm:$0xff]  ;;  %v1636_v22 = vld [vmem:[%s1749_s17 + $0xd8] sm:$0xff] }
  0x15   : > { %1686 = vmatpush.bf16.msra.mxu3 %v1615_v1  ;;  %378 = vmatpush.bf16.msra.mxu0 %v1615_v1  ;;  %v1609_v21 = vld [vmem:[%s1749_s17] sm:$0xff]  ;;  %v1632_v23 = vld [vmem:[%s1749_s17 + $0xb8] sm:$0xff]  ;;  %v1635_v32 = vld [vmem:[%s1749_s17 + $0xd0] sm:$0xff] }
  0x16   : > { %v1621_v24 = vld [vmem:[%s1749_s17 + $0x60] sm:$0xff]  ;;  %v1640_v26 = vld [vmem:[%s1749_s17 + $0xf8] sm:$0xff]  ;;  %v1631_v33 = vld [vmem:[%s1749_s17 + $0xb0] sm:$0xff] }
  0x17   : > { %v1625_v25 = vld [vmem:[%s1749_s17 + $0x80] sm:$0xff]  ;;  %v1644_v27 = vld [vmem:[%s1749_s17 + $0x118] sm:$0xff]  ;;  %v1639_v34 = vld [vmem:[%s1749_s17 + $0xf0] sm:$0xff] }
  0x18   : > { %1687 = vmatpush.bf16.msra.mxu1 %v1614_v2  ;;  %1688 = vmatpush.bf16.msra.mxu2 %v1614_v2  ;;  %v1657_v30 = vld [vmem:[%s2050_s1 + $0x60] sm:$0xff]  ;;  %v1643_v35 = vld [vmem:[%s1749_s17 + $0x110] sm:$0xff]  ;;  %v1634_v36 = vld [vmem:[%s1749_s17 + $0xc8] sm:$0xff] }
  0x19   : > { %1689 = vmatpush.bf16.msra.mxu3 %v1614_v2  ;;  %379 = vmatpush.bf16.msra.mxu0 %v1614_v2  ;;  %v1661_v31 = vld [vmem:[%s2050_s1 + $0x80] sm:$0xff]  ;;  %v1630_v37 = vld [vmem:[%s1749_s17 + $0xa8] sm:$0xff]  ;;  %v1663_v51 = vld [vmem:[%s2050_s1 + $0x90] sm:$0xff] }
  0x1a   : > { %v1638_v38 = vld [vmem:[%s1749_s17 + $0xe8] sm:$0xff]  ;;  %v1633_v44 = vld [vmem:[%s1749_s17 + $0xc0] sm:$0xff]  ;;  %v1648_v52 = vld [vmem:[%s2050_s1 + $0x18] sm:$0xff] }
  0x1b   : > { %v1642_v39 = vld [vmem:[%s1749_s17 + $0x108] sm:$0xff]  ;;  %v1637_v45 = vld [vmem:[%s1749_s17 + $0xe0] sm:$0xff]  ;;  %v1656_v53 = vld [vmem:[%s2050_s1 + $0x58] sm:$0xff] }
  0x1c   : > { %1690 = vmatpush.bf16.msra.mxu1 %v1613_v3  ;;  %1691 = vmatpush.bf16.msra.mxu2 %v1613_v3  ;;  %v1662_v43 = vld [vmem:[%s2050_s1 + $0x88] sm:$0xff]  ;;  %v1629_v46 = vld [vmem:[%s1749_s17 + $0xa0] sm:$0xff]  ;;  %v1660_v54 = vld [vmem:[%s2050_s1 + $0x78] sm:$0xff] }
  0x1d   : > { %1692 = vmatpush.bf16.msra.mxu3 %v1613_v3  ;;  %380 = vmatpush.bf16.msra.mxu0 %v1613_v3  ;;  %v1641_v47 = vld [vmem:[%s1749_s17 + $0x100] sm:$0xff]  ;;  %v1664_v55 = vld [vmem:[%s2050_s1 + $0x98] sm:$0xff]  ;;  %v1139_v58 = vld [vmem:[%s2051_s2 + $0x8] sm:$0xff] }
  0x1e   : > { %v1138_v56 = vld [vmem:[%s2051_s2] sm:$0xff]  ;;  %v1140_v63 = vld [vmem:[%s2051_s2 + $0x10] sm:$0xff]  ;;  %v1666_v0 = vld [vmem:[%s2050_s1 + $0xa8] sm:$0xff] }
  0x1f   : > { %1315 = vmatmul.msk.bf16.vlgmr.msra.gmra.mxu1 %vm360_vm0, %v1650_v6  ;;  %1316 = vmatmul.msk.bf16.vlgmr.msra.gmra.mxu2 %vm360_vm0, %v1651_v7  ;;  %v1665_v59 = vld [vmem:[%s2050_s1 + $0xa0] sm:$0xff]  ;;  %v1670_v1 = vld [vmem:[%s2050_s1 + $0xc8] sm:$0xff]  ;;  %v1671_v6 = vld [vmem:[%s2050_s1 + $0xd0] sm:$0xff] }
  0x20   : > { %547 = vmatpush.bf16.msrb.mxu2 %v1620_v4  ;;  %462 = vmatpush.bf16.msrb.mxu1 %v1612_v5  ;;  %v1669_v60 = vld [vmem:[%s2050_s1 + $0xc0] sm:$0xff]  ;;  %v1674_v2 = vld [vmem:[%s2050_s1 + $0xe8] sm:$0xff]  ;;  %v1141_v4 = vld [vmem:[%s2051_s2 + $0x18] sm:$0xff] }
  0x21   : > { %1317 = vmatmul.msk.bf16.vlgmr.msra.gmra.mxu3 %vm360_vm0, %v1652_v8  ;;  %1314 = vmatmul.msk.bf16.vlgmr.msra.gmra.mxu0 %vm360_vm0, %v1649_v9  ;;  %v1673_v61 = vld [vmem:[%s2050_s1 + $0xe0] sm:$0xff]  ;;  %v1678_v3 = vld [vmem:[%s2050_s1 + $0x108] sm:$0xff]  ;;  %v1667_v5 = vld [vmem:[%s2050_s1 + $0xb0] sm:$0xff] }
  0x22   : > { %640 = vmatpush.bf16.msrb.mxu3 %v1624_v10  ;;  %733 = vmatpush.bf16.msrb.mxu0 %v1628_v11  ;;  %v1677_v62 = vld [vmem:[%s2050_s1 + $0x100] sm:$0xff]  ;;  %v1675_v7 = vld [vmem:[%s2050_s1 + $0xf0] sm:$0xff]  ;;  %v1145_v9 = vld [vmem:[%s2051_s2 + $0x38] sm:$0xff] }
  0x23   : > { %1148 = vperm.xlu0 %1703, %v1138_v56   ;;  %1158 = vperm.xlu1 %1704, %v1140_v63   ;;  %v1679_v8 = vld [vmem:[%s2050_s1 + $0x110] sm:$0xff]  ;;  %v1668_v11 = vld [vmem:[%s2050_s1 + $0xb8] sm:$0xff] }
  0x24   : > { %548 = vmatpush.bf16.msrb.mxu2 %v1619_v12  ;;  %463 = vmatpush.bf16.msrb.mxu1 %v1611_v13  ;;  %v1144_v10 = vld [vmem:[%s2051_s2 + $0x30] sm:$0xff]  ;;  %v1672_v12 = vld [vmem:[%s2050_s1 + $0xd8] sm:$0xff] }
  0x26   : > { %641 = vmatpush.bf16.msrb.mxu3 %v1623_v14  ;;  %734 = vmatpush.bf16.msrb.mxu0 %v1627_v15  ;;  %v1676_v14 = vld [vmem:[%s2050_s1 + $0xf8] sm:$0xff] }
  0x27   : > { %v1680_v15 = vld [vmem:[%s2050_s1 + $0x118] sm:$0xff] }
  0x28   : > { %549 = vmatpush.bf16.msrb.mxu2 %v1618_v16  ;;  %464 = vmatpush.bf16.msrb.mxu1 %v1610_v17  ;;  %v1142_v17 = vld [vmem:[%s2051_s2 + $0x20] sm:$0xff] }
  0x29   : > { %1168 = vperm.xlu2 %1705, %v1142_v17  }
  0x2a   : > { %642 = vmatpush.bf16.msrb.mxu3 %v1622_v18  ;;  %735 = vmatpush.bf16.msrb.mxu0 %v1626_v19 }
  0x2b   : > { %1153 = vperm.xlu0 %1703, %v1139_v58   ;;  %1163 = vperm.xlu1 %1704, %v1141_v4  }
  0x2c   : > { %550 = vmatpush.bf16.msrb.mxu2 %v1617_v20  ;;  %465 = vmatpush.bf16.msrb.mxu1 %v1609_v21 }
  0x2e   : > { %643 = vmatpush.bf16.msrb.mxu3 %v1621_v24  ;;  %736 = vmatpush.bf16.msrb.mxu0 %v1625_v25 }
  0x2f   : > { %1350 = vmatmul.msk.bf16.vlgmr.msrb.gmra.mxu1 %vm360_vm0, %v1645_v28  ;;  %1386 = vmatmul.msk.bf16.vlgmr.msrb.gmra.mxu2 %vm360_vm0, %v1653_v29 }
  0x30   : > { %919 = vmatpush.bf16.msra.mxu2 %v1636_v22  ;;  %826 = vmatpush.bf16.msra.mxu1 %v1632_v23  ;;  %v1143_v22 = vld [vmem:[%s2051_s2 + $0x28] sm:$0xff] }
  0x31   : > { %1422 = vmatmul.msk.bf16.vlgmr.msrb.gmra.mxu3 %vm360_vm0, %v1657_v30  ;;  %1458 = vmatmul.msk.bf16.vlgmr.msrb.gmra.mxu0 %vm360_vm0, %v1661_v31 }
  0x32   : > { %1012 = vmatpush.bf16.msra.mxu3 %v1640_v26  ;;  %1105 = vmatpush.bf16.msra.mxu0 %v1644_v27 }
  0x33   : > { %1183 = vperm.xlu1 %1704, %v1145_v9   ;;  %1178 = vperm.xlu0 %1703, %v1144_v10  }
  0x34   : > { %920 = vmatpush.bf16.msra.mxu2 %v1635_v32  ;;  %827 = vmatpush.bf16.msra.mxu1 %v1631_v33 }
  0x35   : > { %1173 = vperm.xlu2 %1705, %v1143_v22  }
  0x36   : > { %1013 = vmatpush.bf16.msra.mxu3 %v1639_v34  ;;  %1106 = vmatpush.bf16.msra.mxu0 %v1643_v35 }
  0x38   : > { %921 = vmatpush.bf16.msra.mxu2 %v1634_v36  ;;  %828 = vmatpush.bf16.msra.mxu1 %v1630_v37 }
  0x3a   : > { %1014 = vmatpush.bf16.msra.mxu3 %v1638_v38  ;;  %1107 = vmatpush.bf16.msra.mxu0 %v1642_v39 }
  0x3c   : > { %922 = vmatpush.bf16.msra.mxu2 %v1633_v44  ;;  %829 = vmatpush.bf16.msra.mxu1 %v1629_v46 }
  0x3e   : > { %1015 = vmatpush.bf16.msra.mxu3 %v1637_v45  ;;  %1108 = vmatpush.bf16.msra.mxu0 %v1641_v47 }
  0x3f   : > { %1351 = vmatmul.msk.bf16.gmra.mxu1 %vm360_vm0, %v1646_v40  ;;  %1387 = vmatmul.msk.bf16.gmra.mxu2 %vm360_vm0, %v1654_v41 }
  0x41   : > { %1423 = vmatmul.msk.bf16.gmra.mxu3 %vm360_vm0, %v1658_v42  ;;  %1459 = vmatmul.msk.bf16.gmra.mxu0 %vm360_vm0, %v1662_v43 }
  0x4f   : > { %1352 = vmatmul.msk.bf16.gmra.mxu1 %vm360_vm0, %v1647_v48  ;;  %1388 = vmatmul.msk.bf16.gmra.mxu2 %vm360_vm0, %v1655_v49 }
  0x51   : > { %1424 = vmatmul.msk.bf16.gmra.mxu3 %vm360_vm0, %v1659_v50  ;;  %1460 = vmatmul.msk.bf16.gmra.mxu0 %vm360_vm0, %v1663_v51 }
  0x5f   : > { %1353 = vmatmul.msk.bf16.gmra.mxu1 %vm360_vm0, %v1648_v52  ;;  %1389 = vmatmul.msk.bf16.gmra.mxu2 %vm360_vm0, %v1656_v53 }
  0x61   : > { %1425 = vmatmul.msk.bf16.gmra.mxu3 %vm360_vm0, %v1660_v54  ;;  %1461 = vmatmul.msk.bf16.gmra.mxu0 %vm360_vm0, %v1664_v55 }
  0x6f   : > { %1494 = vmatmul.msk.bf16.vlgmr.msra.gmra.mxu1 %vm360_vm0, %v1665_v59  ;;  %1530 = vmatmul.msk.bf16.vlgmr.msra.gmra.mxu2 %vm360_vm0, %v1669_v60 }
  0x71   : > { %1566 = vmatmul.msk.bf16.vlgmr.msra.gmra.mxu3 %vm360_vm0, %v1673_v61  ;;  %1602 = vmatmul.msk.bf16.vlgmr.msra.gmra.mxu0 %vm360_vm0, %v1677_v62 }
  0x7f   : > { %1495 = vmatmul.msk.bf16.gmra.mxu1 %vm360_vm0, %v1666_v0  ;;  %1531 = vmatmul.msk.bf16.gmra.mxu2 %vm360_vm0, %v1670_v1 }
  0x81   : > { %1567 = vmatmul.msk.bf16.gmra.mxu3 %vm360_vm0, %v1674_v2  ;;  %1603 = vmatmul.msk.bf16.gmra.mxu0 %vm360_vm0, %v1678_v3 }
  0x8f   : > { %1496 = vmatmul.msk.bf16.gmra.mxu1 %vm360_vm0, %v1667_v5  ;;  %1532 = vmatmul.msk.bf16.gmra.mxu2 %vm360_vm0, %v1671_v6 }
  0x91   : > { %1568 = vmatmul.msk.bf16.gmra.mxu3 %vm360_vm0, %v1675_v7  ;;  %1604 = vmatmul.msk.bf16.gmra.mxu0 %vm360_vm0, %v1679_v8 }
  0x95   : > { %v1149_v7 = vpop.permute.xlu0 %1148 }
  0x9c   : > { %v1939_v13 = vpop.f32.mrf.mxu1 }
  0x9e   : > { %v382_v16 = vpop.f32.mrf.mxu0 }
  0x9f   : > { %1497 = vmatmul.msk.bf16.gmra.mxu1 %vm360_vm0, %v1668_v11  ;;  %1533 = vmatmul.msk.bf16.gmra.mxu2 %vm360_vm0, %v1672_v12 }
  0xa1   : > { %1569 = vmatmul.msk.bf16.gmra.mxu3 %vm360_vm0, %v1676_v14  ;;  %1605 = vmatmul.msk.bf16.gmra.mxu0 %vm360_vm0, %v1680_v15 }
  0xa2   : > { %v1954_v18 = vpop.f32.mrf.mxu2 }
  0xa4   : > { %v1956_v19 = vpop.f32.mrf.mxu3  ;;  %v1958_v20 = vpop.f32.mrf.mxu1 }
  0xa6   : > { %v384_v21 = vpop.f32.mrf.mxu0 }
  0xaa   : > { %v1963_v23 = vpop.f32.mrf.mxu2 }
  0xac   : > { %v1965_v24 = vpop.f32.mrf.mxu3  ;;  %v467_v25 = vpop.f32.mrf.mxu1 }
  0xad   : > { %v468_v54 = vadd.f32 %v467_v25, %v382_v16 }
  0xae   : > { %v738_v26 = vpop.f32.mrf.mxu0 }
  0xb2   : > { %v552_v27 = vpop.f32.mrf.mxu2 }
  0xb3   : > { %v572_v56 = vadd.f32 %v552_v27, %v468_v54 }
  0xb4   : > { %v645_v28 = vpop.f32.mrf.mxu3  ;;  %v469_v29 = vpop.f32.mrf.mxu1 }
  0xb5   : > { %v665_v58 = vadd.f32 %v645_v28, %v572_v56  ;;  %v470_v61 = vadd.f32 %v469_v29, %v384_v21 }
  0xb6   : > { %v740_v30 = vpop.f32.mrf.mxu0 }
  0xb7   : > { %v758_v0 = vadd.f32 %v738_v26, %v665_v58 }
  0xba   : > { %v554_v31 = vpop.f32.mrf.mxu2 }
  0xbb   : > { %v573_v63 = vadd.f32 %v554_v31, %v470_v61  ;;  %v1154_v31 = vpop.permute.xlu0 %1153 }
  0xbc   : > { %v647_v32 = vpop.f32.mrf.mxu3  ;;  %v472_v33 = vpop.f32.mrf.mxu1 }
  0xbd   : > { %v666_v3 = vadd.f32 %v647_v32, %v573_v63  ;;  %v473_v8 = vadd.f32 %v472_v33, %v1939_v13 }
  0xbe   : > { %v743_v34 = vpop.f32.mrf.mxu0 }
  0xbf   : > { %v759_v12 = vadd.f32 %v740_v30, %v666_v3 }
  0xc2   : > { %v557_v35 = vpop.f32.mrf.mxu2 }
  0xc3   : > { %v574_v11 = vadd.f32 %v557_v35, %v473_v8 }
  0xc4   : > { %v650_v36 = vpop.f32.mrf.mxu3  ;;  %v474_v37 = vpop.f32.mrf.mxu1 }
  0xc5   : > { %v667_v21 = vadd.f32 %v650_v36, %v574_v11  ;;  %v475_v27 = vadd.f32 %v474_v37, %v1958_v20 }
  0xc6   : > { %v1967_v38 = vpop.f32.mrf.mxu0 }
  0xc7   : > { %v760_v33 = vadd.f32 %v743_v34, %v667_v21 }
  0xca   : > { %v559_v39 = vpop.f32.mrf.mxu2 }
  0xcb   : > { %v575_v32 = vadd.f32 %v559_v39, %v475_v27 }
  0xcc   : > { %v652_v40 = vpop.f32.mrf.mxu3  ;;  %v1969_v41 = vpop.f32.mrf.mxu1 }
  0xcd   : > { %v668_v58 = vadd.f32 %v652_v40, %v575_v32  ;;  %v478_v20 = vadd.f32 %v1969_v41, %v1954_v18 }
  0xce   : > { %v1971_v42 = vpop.f32.mrf.mxu0 }
  0xcf   : > { %v761_v34 = vadd.f32 %v1967_v38, %v668_v58 }
  0xd2   : > { %v1973_v43 = vpop.f32.mrf.mxu2 }
  0xd4   : > { %v1975_v44 = vpop.f32.mrf.mxu3  ;;  %v1977_v45 = vpop.f32.mrf.mxu1 }
  0xd5   : > { %v480_v41 = vadd.f32 %v1977_v45, %v1963_v23 }
  0xd6   : > { %v1979_v46 = vpop.f32.mrf.mxu0 }
  0xda   : > { %v1981_v47 = vpop.f32.mrf.mxu2 }
  0xdc   : > { %v1983_v48 = vpop.f32.mrf.mxu3  ;;  %v1985_v49 = vpop.f32.mrf.mxu1 }
  0xde   : > { %v1987_v50 = vpop.f32.mrf.mxu0 }
  0xe2   : > { %v1989_v51 = vpop.f32.mrf.mxu2 }
  0xe4   : > { %v1991_v52 = vpop.f32.mrf.mxu3  ;;  %v1993_v53 = vpop.f32.mrf.mxu1 }
  0xe6   : > { %v1995_v55 = vpop.f32.mrf.mxu0 }
  0xea   : > { %v1997_v57 = vpop.f32.mrf.mxu2 }
  0xec   : > { %v1999_v59 = vpop.f32.mrf.mxu3  ;;  %v831_v60 = vpop.f32.mrf.mxu1 }
  0xed   : > { %v851_v1 = vadd.f32 %v831_v60, %v758_v0  ;;  %v1159_v0 = vpop.permute.xlu1 %1158 }
  0xee   : > { %v1110_v62 = vpop.f32.mrf.mxu0 }
  0xf2   : > { %v924_v2 = vpop.f32.mrf.mxu2 }
  0xf3   : > { %v944_v4 = vadd.f32 %v924_v2, %v851_v1  ;;  %v576_v2 = vadd.f32 %v1973_v43, %v478_v20 }
  0xf4   : > { %v1017_v5 = vpop.f32.mrf.mxu3  ;;  %v833_v6 = vpop.f32.mrf.mxu1 }
  0xf5   : > { %v1037_v9 = vadd.f32 %v1017_v5, %v944_v4  ;;  %v852_v15 = vadd.f32 %v833_v6, %v759_v12  ;;  %v669_v6 = vadd.f32 %v1975_v44, %v576_v2  ;;  %v1164_v11 = vpop.permute.xlu1 %1163  ;;  %v577_v12 = vadd.f32 %v1981_v47, %v480_v41 }
  0xf6   : > { %v1112_v10 = vpop.f32.mrf.mxu0  ;;  %v483_v47 = vadd.f32 %v1985_v49, %v1956_v19  ;;  %v485_v49 = vadd.f32 %v1993_v53, %v1965_v24 }
  0xf7   : > { %v1130_v14 = vadd.f32 %v1110_v62, %v1037_v9  ;;  %v762_v38 = vadd.f32 %v1971_v42, %v669_v6  ;;  %v670_v21 = vadd.f32 %v1983_v48, %v577_v12 }
  0xf8   : > { %v578_v42 = vadd.f32 %v1989_v51, %v483_v47 }
  0xf9   : > { %v1186_v16 = vadd.f32 %v1149_v7, %v1130_v14 }
  0xfa   : > { %v926_v17 = vpop.f32.mrf.mxu2 }
  0xfb   : > { %v1194_v22 = vmax.f32 %v1186_v16, 0.0  ;;  %v945_v25 = vadd.f32 %v926_v17, %v852_v15 }
  0xfc   : > { %v1019_v26 = vpop.f32.mrf.mxu3  ;;  %v836_v13 = vpop.f32.mrf.mxu1 }
  0xfd   : > { %v1202_v28 = vpack.c.bf16 %v1194_v22, %v1194_v22  ;;  %v1038_v29 = vadd.f32 %v1019_v26, %v945_v25  ;;  %v853_v36 = vadd.f32 %v836_v13, %v760_v33  ;;  %v1169_v26 = vpop.permute.xlu2 %1168  ;;  %v671_v33 = vadd.f32 %v1991_v52, %v578_v42  ;;  %v1184_v41 = vpop.permute.xlu1 %1183 }
  0xfe   : > { %v1115_v30 = vpop.f32.mrf.mxu0 }
  0xff   : > { %1211 = vst.msk [vmem:[%s2006_s7] sm:$0xf] %vm1210_vm1, %v1202_v28  ;;  %v1131_v35 = vadd.f32 %v1112_v10, %v1038_v29  ;;  %v763_v28 = vadd.f32 %v1979_v46, %v670_v21  ;;  %v579_v46 = vadd.f32 %v1997_v57, %v485_v49 }
 0x101   : > { %v1187_v54 = vadd.f32 %v1154_v31, %v1131_v35 }
 0x102   : > { %v929_v56 = vpop.f32.mrf.mxu2 }
 0x103   : > { %v1195_v60 = vmax.f32 %v1187_v54, 0.0  ;;  %v946_v61 = vadd.f32 %v929_v56, %v853_v36 }
 0x104   : > { %v1022_v62 = vpop.f32.mrf.mxu3  ;;  %v838_v63 = vpop.f32.mrf.mxu1 }
 0x105   : > { %v1203_v37 = vpack.c.bf16 %v1195_v60, %v1195_v60  ;;  %v1039_v1 = vadd.f32 %v1022_v62, %v946_v61  ;;  %v854_v40 = vadd.f32 %v838_v63, %v761_v34  ;;  %v1174_v58 = vpop.permute.xlu2 %1173  ;;  %v764_v60 = vadd.f32 %v1987_v50, %v671_v33  ;;  %v1179_v50 = vpop.permute.xlu0 %1178 }
 0x106   : > { %v1117_v39 = vpop.f32.mrf.mxu0 }
 0x107   : > { %1212 = vst.msk [vmem:[%s2006_s7 + $0x4] sm:$0xf] %vm1210_vm1, %v1203_v37  ;;  %v1132_v3 = vadd.f32 %v1115_v30, %v1039_v1 }
 0x109   : > { %v1188_v4 = vadd.f32 %v1159_v0, %v1132_v3  ;;  %v672_v0 = vadd.f32 %v1999_v59, %v579_v46 }
 0x10a   : > { %v931_v5 = vpop.f32.mrf.mxu2 }
 0x10b   : > { %v1196_v7 = vmax.f32 %v1188_v4, 0.0  ;;  %v947_v8 = vadd.f32 %v931_v5, %v854_v40  ;;  %v765_v34 = vadd.f32 %v1995_v55, %v672_v0 }
 0x10c   : > { %v1024_v9 = vpop.f32.mrf.mxu3  ;;  %v841_v18 = vpop.f32.mrf.mxu1 }
 0x10d   : > { %v1204_v10 = vpack.c.bf16 %v1196_v7, %v1196_v7  ;;  %v1040_v43 = vadd.f32 %v1024_v9, %v947_v8  ;;  %v855_v44 = vadd.f32 %v841_v18, %v762_v38 }
 0x10e   : > { %v1120_v15 = vpop.f32.mrf.mxu0 }
 0x10f   : > { %1213 = vst.msk [vmem:[%s2006_s7 + $0x8] sm:$0xf] %vm1210_vm1, %v1204_v10  ;;  %v1133_v14 = vadd.f32 %v1117_v39, %v1040_v43 }
 0x111   : > { %v1189_v16 = vadd.f32 %v1164_v11, %v1133_v14 }
 0x112   : > { %v934_v17 = vpop.f32.mrf.mxu2 }
 0x113   : > { %v1197_v22 = vmax.f32 %v1189_v16, 0.0  ;;  %v948_v25 = vadd.f32 %v934_v17, %v855_v44 }
 0x114   : > { %v1027_v23 = vpop.f32.mrf.mxu3  ;;  %v843_v45 = vpop.f32.mrf.mxu1 }
 0x115   : > { %v1205_v13 = vpack.c.bf16 %v1197_v22, %v1197_v22  ;;  %v1041_v27 = vadd.f32 %v1027_v23, %v948_v25  ;;  %v856_v30 = vadd.f32 %v843_v45, %v763_v28 }
 0x116   : > { %v1122_v31 = vpop.f32.mrf.mxu0 }
 0x117   : > { %1214 = vst.msk [vmem:[%s2006_s7 + $0xc] sm:$0xf] %vm1210_vm1, %v1205_v13  ;;  %v1134_v29 = vadd.f32 %v1120_v15, %v1041_v27 }
 0x119   : > { %v1190_v48 = vadd.f32 %v1169_v26, %v1134_v29 }
 0x11a   : > { %v936_v32 = vpop.f32.mrf.mxu2 }
 0x11b   : > { %v1198_v35 = vmax.f32 %v1190_v48, 0.0  ;;  %v949_v36 = vadd.f32 %v936_v32, %v856_v30 }
 0x11c   : > { %v1029_v54 = vpop.f32.mrf.mxu3  ;;  %v846_v19 = vpop.f32.mrf.mxu1 }
 0x11d   : > { %v1206_v51 = vpack.c.bf16 %v1198_v35, %v1198_v35  ;;  %v1042_v56 = vadd.f32 %v1029_v54, %v949_v36  ;;  %v857_v62 = vadd.f32 %v846_v19, %v764_v60 }
 0x11e   : > { %v1125_v24 = vpop.f32.mrf.mxu0 }
 0x11f   : > { %1215 = vst.msk [vmem:[%s2006_s7 + $0x10] sm:$0xf] %vm1210_vm1, %v1206_v51  ;;  %v1135_v61 = vadd.f32 %v1122_v31, %v1042_v56 }
 0x121   : > { %v1191_v52 = vadd.f32 %v1174_v58, %v1135_v61 }
 0x122   : > { %v939_v63 = vpop.f32.mrf.mxu2 }
 0x123   : > { %v1199_v20 = vmax.f32 %v1191_v52, 0.0  ;;  %v950_v37 = vadd.f32 %v939_v63, %v857_v62 }
 0x124   : > { %v1032_v1 = vpop.f32.mrf.mxu3  ;;  %v848_v2 = vpop.f32.mrf.mxu1 }
 0x125   : > { %v1207_v53 = vpack.c.bf16 %v1199_v20, %v1199_v20  ;;  %v1043_v39 = vadd.f32 %v1032_v1, %v950_v37  ;;  %v858_v40 = vadd.f32 %v848_v2, %v765_v34 }
 0x126   : > { %v1127_v9 = vpop.f32.mrf.mxu0 }
 0x127   : > { %1216 = vst.msk [vmem:[%s2006_s7 + $0x14] sm:$0xf] %vm1210_vm1, %v1207_v53  ;;  %v1136_v57 = vadd.f32 %v1125_v24, %v1043_v39 }
 0x129   : > { %v1192_v3 = vadd.f32 %v1179_v50, %v1136_v57 }
 0x12a   : > { %v941_v4 = vpop.f32.mrf.mxu2 }
 0x12b   : > { %v1200_v5 = vmax.f32 %v1192_v3, 0.0  ;;  %v951_v59 = vadd.f32 %v941_v4, %v858_v40 }
 0x12c   : > { %v1034_v6 = vpop.f32.mrf.mxu3 }
 0x12d   : > { %v1208_v7 = vpack.c.bf16 %v1200_v5, %v1200_v5  ;;  %v1044_v8 = vadd.f32 %v1034_v6, %v951_v59 }
 0x12f   : > { %1217 = vst.msk [vmem:[%s2006_s7 + $0x18] sm:$0xf] %vm1210_vm1, %v1208_v7  ;;  %v1137_v18 = vadd.f32 %v1127_v9, %v1044_v8 }
 0x131   : > { %v1193_v10 = vadd.f32 %v1184_v41, %v1137_v18 }
 0x133   : > { %v1201_v43 = vmax.f32 %v1193_v10, 0.0 }
 0x135   : > { %v1209_v11 = vpack.c.bf16 %v1201_v43, %v1201_v43 }
 0x137   : > { %1218 = vst.msk [vmem:[%s2006_s7 + $0x1c] sm:$0xf] %vm1210_vm1, %v1209_v11 }
 0x138 PF: > { %s13_s12 = sadd.s32 1, %s1712_s12  }
 0x139   : > { %p10_p4 = scmp.ge.s32.totalorder %s13_s12, 4  }
 0x13b   :  { %12 = sbr.rel (!%p10_p4) target bundleno = 1 (0x1), region = 62 }

// kernel: dqn_forward.7
= control target key start
LH: loop header
LB: loop body
LE: loop exit
PB: predicated region body
PF: predicated region fallthrough
CT: control target
= control target key end

     0   :  { %s1906_s0 = inlined_call_operand.vmem [shape: bf16[2,256], index: 0, kind: input, shape index: {}]   ;;  %s1907_s1 = inlined_call_operand.vmem [shape: bf16[256,512], index: 1, kind: input, shape index: {}]   ;;  %s1908_s2 = inlined_call_operand.vmem [shape: f32[1,512], index: 2, kind: input, shape index: {}]   ;;  %s1909_s3 = inlined_call_operand.vmem [shape: bf16[512,128], index: 3, kind: input, shape index: {}]   ;;  %s1910_s4 = inlined_call_operand.vmem [shape: f32[1,128], index: 4, kind: input, shape index: {}]   ;;  %s1911_s5 = inlined_call_operand.hbm [shape: f32[2,128], index: 5, kind: output, shape index: {}]  }
   0x1   :  { %v977_v0 = vld [vmem:[%s1907_s1 + $0xe0] sm:$0xf]  ;;  %v1277_v1 = vld [vmem:[%s1907_s1 + $0xec] sm:$0xf0]  ;;  %v1275_v5 = vld [vmem:[%s1907_s1 + $0xe4] sm:$0xf] }
   0x2   :  { %v1105_v2 = vld [vmem:[%s1907_s1 + $0x1e0] sm:$0xf]  ;;  %v978_v3 = vor.u32 %v1277_v1, %v977_v0  ;;  %v1309_v4 = vld [vmem:[%s1907_s1 + $0x1ec] sm:$0xf0]  ;;  %v979_v6 = vld [vmem:[%s1907_s1 + $0xf0] sm:$0xf0] }
   0x3   :  { %v1106_v7 = vor.u32 %v1309_v4, %v1105_v2  ;;  %v982_v8 = vor.u32 %v1275_v5, %v979_v6  ;;  %v1307_v9 = vld [vmem:[%s1907_s1 + $0x1e4] sm:$0xf]  ;;  %v1107_v10 = vld [vmem:[%s1907_s1 + $0x1f0] sm:$0xf0]  ;;  %v961_v11 = vld [vmem:[%s1907_s1 + $0xc0] sm:$0xf] }
   0x4   :  { %422 = vmatpush.bf16.msra.mxu0 %v978_v3  ;;  %v1110_v12 = vor.u32 %v1307_v9, %v1107_v10  ;;  %v1273_v13 = vld [vmem:[%s1907_s1 + $0xcc] sm:$0xf0]  ;;  %v1089_v14 = vld [vmem:[%s1907_s1 + $0x1c0] sm:$0xf]  ;;  %v1271_v18 = vld [vmem:[%s1907_s1 + $0xc4] sm:$0xf] }
   0x5   :  { %v1305_v15 = vld [vmem:[%s1907_s1 + $0x1cc] sm:$0xf0]  ;;  %435 = vmatpush.bf16.msra.mxu1 %v1106_v7  ;;  %448 = vmatpush.bf16.msra.mxu2 %v982_v8  ;;  %v962_v16 = vor.u32 %v1273_v13, %v961_v11  ;;  %v963_v19 = vld [vmem:[%s1907_s1 + $0xd0] sm:$0xf0]  ;;  %v1303_v20 = vld [vmem:[%s1907_s1 + $0x1c4] sm:$0xf] }
   0x6   :  { %v1090_v17 = vor.u32 %v1305_v15, %v1089_v14  ;;  %461 = vmatpush.bf16.msra.mxu3 %v1110_v12  ;;  %v966_v21 = vor.u32 %v1271_v18, %v963_v19  ;;  %v1091_v22 = vld [vmem:[%s1907_s1 + $0x1d0] sm:$0xf0]  ;;  %v945_v23 = vld [vmem:[%s1907_s1 + $0xa0] sm:$0xf]  ;;  %v1269_v24 = vld [vmem:[%s1907_s1 + $0xac] sm:$0xf0] }
   0x7   :  { %v1094_v25 = vor.u32 %v1303_v20, %v1091_v22  ;;  %v1073_v26 = vld [vmem:[%s1907_s1 + $0x1a0] sm:$0xf]  ;;  %v1301_v27 = vld [vmem:[%s1907_s1 + $0x1ac] sm:$0xf0]  ;;  %v1267_v28 = vld [vmem:[%s1907_s1 + $0xa4] sm:$0xf]  ;;  %v946_v29 = vor.u32 %v1269_v24, %v945_v23 }
   0x8   :  { %423 = vmatpush.bf16.msra.mxu0 %v962_v16  ;;  %v947_v30 = vld [vmem:[%s1907_s1 + $0xb0] sm:$0xf0]  ;;  %v1299_v31 = vld [vmem:[%s1907_s1 + $0x1a4] sm:$0xf]  ;;  %v1074_v33 = vor.u32 %v1301_v27, %v1073_v26  ;;  %v929_v35 = vld [vmem:[%s1907_s1 + $0x80] sm:$0xf] }
   0x9   :  { %v1075_v32 = vld [vmem:[%s1907_s1 + $0x1b0] sm:$0xf0]  ;;  %436 = vmatpush.bf16.msra.mxu1 %v1090_v17  ;;  %449 = vmatpush.bf16.msra.mxu2 %v966_v21  ;;  %v950_v34 = vor.u32 %v1267_v28, %v947_v30  ;;  %v1265_v36 = vld [vmem:[%s1907_s1 + $0x8c] sm:$0xf0]  ;;  %v1057_v37 = vld [vmem:[%s1907_s1 + $0x180] sm:$0xf] }
   0xa   :  { %462 = vmatpush.bf16.msra.mxu3 %v1094_v25  ;;  %v1078_v38 = vor.u32 %v1299_v31, %v1075_v32  ;;  %v1297_v39 = vld [vmem:[%s1907_s1 + $0x18c] sm:$0xf0]  ;;  %v1263_v40 = vld [vmem:[%s1907_s1 + $0x84] sm:$0xf]  ;;  %v931_v41 = vld [vmem:[%s1907_s1 + $0x90] sm:$0xf0]  ;;  %v930_v44 = vor.u32 %v1265_v36, %v929_v35 }
   0xb   :  { %v1295_v42 = vld [vmem:[%s1907_s1 + $0x184] sm:$0xf]  ;;  %v1059_v43 = vld [vmem:[%s1907_s1 + $0x190] sm:$0xf0]  ;;  %v1058_v45 = vor.u32 %v1297_v39, %v1057_v37  ;;  %v934_v46 = vor.u32 %v1263_v40, %v931_v41  ;;  %v913_v47 = vld [vmem:[%s1907_s1 + $0x60] sm:$0xf] }
   0xc   :  { %424 = vmatpush.bf16.msra.mxu0 %v946_v29  ;;  %v1261_v48 = vld [vmem:[%s1907_s1 + $0x6c] sm:$0xf0]  ;;  %v1041_v49 = vld [vmem:[%s1907_s1 + $0x160] sm:$0xf]  ;;  %v1062_v50 = vor.u32 %v1295_v42, %v1059_v43  ;;  %v1259_v52 = vld [vmem:[%s1907_s1 + $0x64] sm:$0xf] }
   0xd   :  { %437 = vmatpush.bf16.msra.mxu1 %v1074_v33  ;;  %450 = vmatpush.bf16.msra.mxu2 %v950_v34  ;;  %v1293_v51 = vld [vmem:[%s1907_s1 + $0x16c] sm:$0xf0]  ;;  %v915_v53 = vld [vmem:[%s1907_s1 + $0x70] sm:$0xf0]  ;;  %v1291_v54 = vld [vmem:[%s1907_s1 + $0x164] sm:$0xf]  ;;  %v914_v56 = vor.u32 %v1261_v48, %v913_v47 }
   0xe   :  { %463 = vmatpush.bf16.msra.mxu3 %v1078_v38  ;;  %v1043_v55 = vld [vmem:[%s1907_s1 + $0x170] sm:$0xf0]  ;;  %v1042_v57 = vor.u32 %v1293_v51, %v1041_v49  ;;  %v918_v58 = vor.u32 %v1259_v52, %v915_v53  ;;  %v897_v59 = vld [vmem:[%s1907_s1 + $0x40] sm:$0xf]  ;;  %v1257_v60 = vld [vmem:[%s1907_s1 + $0x4c] sm:$0xf0] }
   0xf   :  { %v1025_v61 = vld [vmem:[%s1907_s1 + $0x140] sm:$0xf]  ;;  %v1046_v62 = vor.u32 %v1291_v54, %v1043_v55  ;;  %v1289_v63 = vld [vmem:[%s1907_s1 + $0x14c] sm:$0xf0]  ;;  %v1255_v0 = vld [vmem:[%s1907_s1 + $0x44] sm:$0xf]  ;;  %v898_v4 = vor.u32 %v1257_v60, %v897_v59 }
  0x10   :  { %425 = vmatpush.bf16.msra.mxu0 %v930_v44  ;;  %v899_v1 = vld [vmem:[%s1907_s1 + $0x50] sm:$0xf0]  ;;  %v1287_v2 = vld [vmem:[%s1907_s1 + $0x144] sm:$0xf]  ;;  %v1026_v5 = vor.u32 %v1289_v63, %v1025_v61  ;;  %v881_v7 = vld [vmem:[%s1907_s1 + $0x20] sm:$0xf] }
  0x11   :  { %438 = vmatpush.bf16.msra.mxu1 %v1058_v45  ;;  %451 = vmatpush.bf16.msra.mxu2 %v934_v46  ;;  %v1027_v3 = vld [vmem:[%s1907_s1 + $0x150] sm:$0xf0]  ;;  %v902_v6 = vor.u32 %v1255_v0, %v899_v1  ;;  %v1253_v8 = vld [vmem:[%s1907_s1 + $0x2c] sm:$0xf0]  ;;  %v1009_v9 = vld [vmem:[%s1907_s1 + $0x120] sm:$0xf] }
  0x12   :  { %464 = vmatpush.bf16.msra.mxu3 %v1062_v50  ;;  %v1030_v10 = vor.u32 %v1287_v2, %v1027_v3  ;;  %v1285_v11 = vld [vmem:[%s1907_s1 + $0x12c] sm:$0xf0]  ;;  %v1251_v12 = vld [vmem:[%s1907_s1 + $0x24] sm:$0xf]  ;;  %v883_v13 = vld [vmem:[%s1907_s1 + $0x30] sm:$0xf0]  ;;  %v882_v17 = vor.u32 %v1253_v8, %v881_v7 }
  0x13   :  { %v1283_v14 = vld [vmem:[%s1907_s1 + $0x124] sm:$0xf]  ;;  %v1011_v15 = vld [vmem:[%s1907_s1 + $0x130] sm:$0xf0]  ;;  %v865_v16 = vld [vmem:[%s1907_s1] sm:$0xf]  ;;  %v1010_v21 = vor.u32 %v1285_v11, %v1009_v9  ;;  %v886_v22 = vor.u32 %v1251_v12, %v883_v13 }
  0x14   :  { %426 = vmatpush.bf16.msra.mxu0 %v914_v56  ;;  %v1249_v18 = vld [vmem:[%s1907_s1 + $0xc] sm:$0xf0]  ;;  %v993_v19 = vld [vmem:[%s1907_s1 + $0x100] sm:$0xf]  ;;  %v1247_v23 = vld [vmem:[%s1907_s1 + $0x4] sm:$0xf]  ;;  %v1014_v26 = vor.u32 %v1283_v14, %v1011_v15 }
  0x15   :  { %439 = vmatpush.bf16.msra.mxu1 %v1042_v57  ;;  %452 = vmatpush.bf16.msra.mxu2 %v918_v58  ;;  %v1281_v20 = vld [vmem:[%s1907_s1 + $0x10c] sm:$0xf0]  ;;  %v867_v24 = vld [vmem:[%s1907_s1 + $0x10] sm:$0xf0]  ;;  %v1279_v25 = vld [vmem:[%s1907_s1 + $0x104] sm:$0xf]  ;;  %v866_v33 = vor.u32 %v1249_v18, %v865_v16 }
  0x16   :  { %465 = vmatpush.bf16.msra.mxu3 %v1046_v62  ;;  %v995_v27 = vld [vmem:[%s1907_s1 + $0x110] sm:$0xf0]  ;;  %v985_v28 = vld [vmem:[%s1907_s1 + $0xe8] sm:$0xf]  ;;  %v1278_v29 = vld [vmem:[%s1907_s1 + $0xf4] sm:$0xf0]  ;;  %v994_v36 = vor.u32 %v1281_v20, %v993_v19  ;;  %v870_v37 = vor.u32 %v1247_v23, %v867_v24 }
  0x17   :  { %v1113_v30 = vld [vmem:[%s1907_s1 + $0x1e8] sm:$0xf]  ;;  %v1310_v31 = vld [vmem:[%s1907_s1 + $0x1f4] sm:$0xf0]  ;;  %v21_v32 = vld [vmem:[%s1906_s0] sm:$0x3]  ;;  %v998_v40 = vor.u32 %v1279_v25, %v995_v27  ;;  %v986_v41 = vor.u32 %v1278_v29, %v985_v28 }
  0x18   :  { %427 = vmatpush.bf16.msra.mxu0 %v898_v4  ;;  %v1276_v34 = vld [vmem:[%s1907_s1 + $0xec] sm:$0xf]  ;;  %v987_v35 = vld [vmem:[%s1907_s1 + $0xf8] sm:$0xf0]  ;;  %97 = vst [vmem:[#allocation1] ss:$9 sm:$0xff] %v21_v32  ;;  %v1114_v42 = vor.u32 %v1310_v31, %v1113_v30 }
  0x19   :  { %440 = vmatpush.bf16.msra.mxu1 %v1026_v5  ;;  %453 = vmatpush.bf16.msra.mxu2 %v902_v6  ;;  %v1308_v38 = vld [vmem:[%s1907_s1 + $0x1ec] sm:$0xf]  ;;  %v1115_v39 = vld [vmem:[%s1907_s1 + $0x1f8] sm:$0xf0]  ;;  %v990_v43 = vor.u32 %v1276_v34, %v987_v35  ;;  %v969_v44 = vld [vmem:[%s1907_s1 + $0xc8] sm:$0xf] }
  0x1a   :  { %466 = vmatpush.bf16.msra.mxu3 %v1030_v10  ;;  %v1274_v45 = vld [vmem:[%s1907_s1 + $0xd4] sm:$0xf0]  ;;  %v1097_v46 = vld [vmem:[%s1907_s1 + $0x1c8] sm:$0xf]  ;;  %v1118_v47 = vor.u32 %v1308_v38, %v1115_v39  ;;  %v1272_v49 = vld [vmem:[%s1907_s1 + $0xcc] sm:$0xf] }
  0x1b   :  { %v1306_v48 = vld [vmem:[%s1907_s1 + $0x1d4] sm:$0xf0]  ;;  %v971_v50 = vld [vmem:[%s1907_s1 + $0xd8] sm:$0xf0]  ;;  %v1304_v51 = vld [vmem:[%s1907_s1 + $0x1cc] sm:$0xf]  ;;  %v970_v53 = vor.u32 %v1274_v45, %v969_v44 }
  0x1c   :  { %428 = vmatpush.bf16.msra.mxu0 %v882_v17  ;;  %v1099_v52 = vld [vmem:[%s1907_s1 + $0x1d8] sm:$0xf0]  ;;  %v953_v54 = vld [vmem:[%s1907_s1 + $0xa8] sm:$0xf]  ;;  %v1270_v55 = vld [vmem:[%s1907_s1 + $0xb4] sm:$0xf0]  ;;  %v1098_v56 = vor.u32 %v1306_v48, %v1097_v46  ;;  %v974_v57 = vor.u32 %v1272_v49, %v971_v50 }
  0x1d   :  { %441 = vmatpush.bf16.msra.mxu1 %v1010_v21  ;;  %454 = vmatpush.bf16.msra.mxu2 %v886_v22  ;;  %v1081_v59 = vld [vmem:[%s1907_s1 + $0x1a8] sm:$0xf]  ;;  %v1102_v61 = vor.u32 %v1304_v51, %v1099_v52  ;;  %v1302_v62 = vld [vmem:[%s1907_s1 + $0x1b4] sm:$0xf0]  ;;  %v1268_v63 = vld [vmem:[%s1907_s1 + $0xac] sm:$0xf]  ;;  %v954_v3 = vor.u32 %v1270_v55, %v953_v54 }
  0x1e   :  { %467 = vmatpush.bf16.msra.mxu3 %v1014_v26  ;;  %v955_v0 = vld [vmem:[%s1907_s1 + $0xb8] sm:$0xf0]  ;;  %v1300_v1 = vld [vmem:[%s1907_s1 + $0x1ac] sm:$0xf]  ;;  %v1082_v4 = vor.u32 %v1302_v62, %v1081_v59  ;;  %v937_v6 = vld [vmem:[%s1907_s1 + $0x88] sm:$0xf] }
  0x1f   :  { %v1651_v58 = vld [vmem:[#allocation1] sm:$0xff]  ;;  %v1656_v60 = vld [vmem:[#allocation1 + $0x9] sm:$0xff]  ;;  %v1083_v2 = vld [vmem:[%s1907_s1 + $0x1b8] sm:$0xf0]  ;;  %v958_v5 = vor.u32 %v1268_v63, %v955_v0 }
  0x20   :  { %429 = vmatpush.bf16.msra.mxu0 %v866_v33  ;;  %v1266_v7 = vld [vmem:[%s1907_s1 + $0x94] sm:$0xf0]  ;;  %v1065_v8 = vld [vmem:[%s1907_s1 + $0x188] sm:$0xf]  ;;  %v1086_v9 = vor.u32 %v1300_v1, %v1083_v2  ;;  %v1264_v11 = vld [vmem:[%s1907_s1 + $0x8c] sm:$0xf] }
  0x21   :  { %442 = vmatpush.bf16.msra.mxu1 %v994_v36  ;;  %455 = vmatpush.bf16.msra.mxu2 %v870_v37  ;;  %v1298_v10 = vld [vmem:[%s1907_s1 + $0x194] sm:$0xf0]  ;;  %v939_v12 = vld [vmem:[%s1907_s1 + $0x98] sm:$0xf0]  ;;  %v1296_v13 = vld [vmem:[%s1907_s1 + $0x18c] sm:$0xf]  ;;  %v938_v15 = vor.u32 %v1266_v7, %v937_v6 }
  0x22   :  { %468 = vmatpush.bf16.msra.mxu3 %v998_v40  ;;  %v1067_v14 = vld [vmem:[%s1907_s1 + $0x198] sm:$0xf0]  ;;  %v1066_v16 = vor.u32 %v1298_v10, %v1065_v8  ;;  %v942_v17 = vor.u32 %v1264_v11, %v939_v12  ;;  %v921_v18 = vld [vmem:[%s1907_s1 + $0x68] sm:$0xf]  ;;  %v1262_v19 = vld [vmem:[%s1907_s1 + $0x74] sm:$0xf0] }
  0x23   :  { %430 = vmatmul.bf16.vlgmr.msra.gmra.mxu0 %v1651_v58  ;;  %v1049_v20 = vld [vmem:[%s1907_s1 + $0x168] sm:$0xf]  ;;  %v1070_v21 = vor.u32 %v1296_v13, %v1067_v14  ;;  %v1294_v22 = vld [vmem:[%s1907_s1 + $0x174] sm:$0xf0]  ;;  %v1260_v23 = vld [vmem:[%s1907_s1 + $0x6c] sm:$0xf]  ;;  %v922_v27 = vor.u32 %v1262_v19, %v921_v18 }
  0x24   :  { %474 = vmatpush.bf16.msrb.mxu0 %v986_v41  ;;  %456 = vmatmul.bf16.vlgmr.msra.gmra.mxu2 %v1651_v58  ;;  %v923_v24 = vld [vmem:[%s1907_s1 + $0x78] sm:$0xf0]  ;;  %v1292_v25 = vld [vmem:[%s1907_s1 + $0x16c] sm:$0xf]  ;;  %v905_v28 = vld [vmem:[%s1907_s1 + $0x48] sm:$0xf]  ;;  %v1050_v30 = vor.u32 %v1294_v22, %v1049_v20 }
  0x25   :  { %487 = vmatpush.bf16.msrb.mxu1 %v1114_v42  ;;  %500 = vmatpush.bf16.msrb.mxu2 %v990_v43  ;;  %v1051_v26 = vld [vmem:[%s1907_s1 + $0x178] sm:$0xf0]  ;;  %v1258_v29 = vld [vmem:[%s1907_s1 + $0x54] sm:$0xf0]  ;;  %v926_v31 = vor.u32 %v1260_v23, %v923_v24  ;;  %v1033_v32 = vld [vmem:[%s1907_s1 + $0x148] sm:$0xf] }
  0x26   :  { %513 = vmatpush.bf16.msrb.mxu3 %v1118_v47  ;;  %443 = vmatmul.bf16.vlgmr.msra.gmra.mxu1 %v1656_v60  ;;  %v1290_v33 = vld [vmem:[%s1907_s1 + $0x154] sm:$0xf0]  ;;  %v1256_v34 = vld [vmem:[%s1907_s1 + $0x4c] sm:$0xf]  ;;  %v1054_v35 = vor.u32 %v1292_v25, %v1051_v26  ;;  %v907_v36 = vld [vmem:[%s1907_s1 + $0x58] sm:$0xf0] }
  0x27   :  { %469 = vmatmul.bf16.vlgmr.msra.gmra.mxu3 %v1656_v60 }
  0x28   :  { %475 = vmatpush.bf16.msrb.mxu0 %v970_v53 }
  0x29   :  { %488 = vmatpush.bf16.msrb.mxu1 %v1098_v56  ;;  %501 = vmatpush.bf16.msrb.mxu2 %v974_v57 }
  0x2a   :  { %514 = vmatpush.bf16.msrb.mxu3 %v1102_v61 }
  0x2c   :  { %476 = vmatpush.bf16.msrb.mxu0 %v954_v3 }
  0x2d   :  { %489 = vmatpush.bf16.msrb.mxu1 %v1082_v4  ;;  %502 = vmatpush.bf16.msrb.mxu2 %v958_v5 }
  0x2e   :  { %515 = vmatpush.bf16.msrb.mxu3 %v1086_v9 }
  0x30   :  { %477 = vmatpush.bf16.msrb.mxu0 %v938_v15 }
  0x31   :  { %490 = vmatpush.bf16.msrb.mxu1 %v1066_v16  ;;  %503 = vmatpush.bf16.msrb.mxu2 %v942_v17 }
  0x32   :  { %516 = vmatpush.bf16.msrb.mxu3 %v1070_v21 }
  0x33   :  { %10 = vsyncpa [#allocation3], 0  ;;  %v1288_v37 = vld [vmem:[%s1907_s1 + $0x14c] sm:$0xf]  ;;  %v1035_v38 = vld [vmem:[%s1907_s1 + $0x158] sm:$0xf0]  ;;  %v906_v39 = vor.u32 %v1258_v29, %v905_v28  ;;  %v1034_v40 = vor.u32 %v1290_v33, %v1033_v32  ;;  %v910_v41 = vor.u32 %v1256_v34, %v907_v36 }
  0x34   :  { %478 = vmatpush.bf16.msrb.mxu0 %v922_v27  ;;  %v889_v42 = vld [vmem:[%s1907_s1 + $0x28] sm:$0xf]  ;;  %v1254_v43 = vld [vmem:[%s1907_s1 + $0x34] sm:$0xf0]  ;;  %v1038_v45 = vor.u32 %v1288_v37, %v1035_v38  ;;  %v1252_v47 = vld [vmem:[%s1907_s1 + $0x2c] sm:$0xf] }
  0x35   :  { %491 = vmatpush.bf16.msrb.mxu1 %v1050_v30  ;;  %504 = vmatpush.bf16.msrb.mxu2 %v926_v31  ;;  %v1017_v44 = vld [vmem:[%s1907_s1 + $0x128] sm:$0xf]  ;;  %v1286_v46 = vld [vmem:[%s1907_s1 + $0x134] sm:$0xf0]  ;;  %v891_v48 = vld [vmem:[%s1907_s1 + $0x38] sm:$0xf0]  ;;  %v890_v51 = vor.u32 %v1254_v43, %v889_v42 }
  0x36   :  { %517 = vmatpush.bf16.msrb.mxu3 %v1054_v35  ;;  %v1284_v49 = vld [vmem:[%s1907_s1 + $0x12c] sm:$0xf]  ;;  %v1019_v50 = vld [vmem:[%s1907_s1 + $0x138] sm:$0xf0]  ;;  %v1018_v52 = vor.u32 %v1286_v46, %v1017_v44  ;;  %v894_v53 = vor.u32 %v1252_v47, %v891_v48  ;;  %v873_v54 = vld [vmem:[%s1907_s1 + $0x8] sm:$0xf] }
  0x37   :  { %v1250_v55 = vld [vmem:[%s1907_s1 + $0x14] sm:$0xf0]  ;;  %v1001_v56 = vld [vmem:[%s1907_s1 + $0x108] sm:$0xf]  ;;  %v1022_v57 = vor.u32 %v1284_v49, %v1019_v50  ;;  %v1248_v61 = vld [vmem:[%s1907_s1 + $0xc] sm:$0xf] }
  0x38   :  { %479 = vmatpush.bf16.msrb.mxu0 %v906_v39  ;;  %v1282_v59 = vld [vmem:[%s1907_s1 + $0x114] sm:$0xf0]  ;;  %v875_v62 = vld [vmem:[%s1907_s1 + $0x18] sm:$0xf0]  ;;  %v1280_v63 = vld [vmem:[%s1907_s1 + $0x10c] sm:$0xf]  ;;  %v874_v1 = vor.u32 %v1250_v55, %v873_v54 }
  0x39   :  { %492 = vmatpush.bf16.msrb.mxu1 %v1034_v40  ;;  %505 = vmatpush.bf16.msrb.mxu2 %v910_v41  ;;  %v1003_v0 = vld [vmem:[%s1907_s1 + $0x118] sm:$0xf0]  ;;  %v1002_v2 = vor.u32 %v1282_v59, %v1001_v56  ;;  %v878_v3 = vor.u32 %v1248_v61, %v875_v62  ;;  %v1317_v8 = vld [vmem:[%s1909_s3 + $0x30] sm:$0xff]  ;;  %v1316_v10 = vld [vmem:[%s1909_s3 + $0x28] sm:$0xff]  ;;  %s1371_s7 = smov [#allocation2]   ;;  %s854_s11 = sshll.u32 %s1911_s5, 4  ;;  %s855_s11 = int_to_ptr.hbm [resolvable:$true] %s854_s11 }
  0x3a   :  { %518 = vmatpush.bf16.msrb.mxu3 %v1038_v45  ;;  %v1006_v4 = vor.u32 %v1280_v63, %v1003_v0  ;;  %v1318_v5 = vld [vmem:[%s1909_s3 + $0x38] sm:$0xff]  ;;  %v1325_v9 = vld [vmem:[%s1909_s3 + $0x70] sm:$0xff]  ;;  %v1324_v11 = vld [vmem:[%s1909_s3 + $0x68] sm:$0xff]  ;;  %s852_s8 = sshll.u32 %s1371_s7, 4  ;;  %s853_s8 = int_to_ptr.vmem [resolvable:$true] %s852_s8 }
  0x3b   :  { %v1326_v6 = vld [vmem:[%s1909_s3 + $0x78] sm:$0xff]  ;;  %v1315_v12 = vld [vmem:[%s1909_s3 + $0x20] sm:$0xff]  ;;  %v1313_v14 = vld [vmem:[%s1909_s3 + $0x10] sm:$0xff] }
  0x3c   :  { %480 = vmatpush.bf16.msrb.mxu0 %v890_v51  ;;  %v1334_v7 = vld [vmem:[%s1909_s3 + $0xb8] sm:$0xff]  ;;  %v1321_v15 = vld [vmem:[%s1909_s3 + $0x50] sm:$0xff]  ;;  %v1312_v17 = vld [vmem:[%s1909_s3 + $0x8] sm:$0xff] }
  0x3d   :  { %493 = vmatpush.bf16.msrb.mxu1 %v1018_v52  ;;  %506 = vmatpush.bf16.msrb.mxu2 %v894_v53  ;;  %v1322_v13 = vld [vmem:[%s1909_s3 + $0x58] sm:$0xff]  ;;  %v1333_v16 = vld [vmem:[%s1909_s3 + $0xb0] sm:$0xff]  ;;  %v1320_v18 = vld [vmem:[%s1909_s3 + $0x48] sm:$0xff] }
  0x3e   :  { %519 = vmatpush.bf16.msrb.mxu3 %v1022_v57  ;;  %v1342_v19 = vld [vmem:[%s1909_s3 + $0xf8] sm:$0xff]  ;;  %v1332_v20 = vld [vmem:[%s1909_s3 + $0xa8] sm:$0xff]  ;;  %v1311_v21 = vld [vmem:[%s1909_s3] sm:$0xff] }
  0x3f   :  { %v1319_v22 = vld [vmem:[%s1909_s3 + $0x40] sm:$0xff]  ;;  %v1341_v23 = vld [vmem:[%s1909_s3 + $0xf0] sm:$0xff]  ;;  %v1340_v25 = vld [vmem:[%s1909_s3 + $0xe8] sm:$0xff] }
  0x40   :  { %481 = vmatpush.bf16.msrb.mxu0 %v874_v1  ;;  %v1331_v24 = vld [vmem:[%s1909_s3 + $0xa0] sm:$0xff]  ;;  %v1330_v26 = vld [vmem:[%s1909_s3 + $0x98] sm:$0xff]  ;;  %v1329_v28 = vld [vmem:[%s1909_s3 + $0x90] sm:$0xff] }
  0x41   :  { %494 = vmatpush.bf16.msrb.mxu1 %v1002_v2  ;;  %507 = vmatpush.bf16.msrb.mxu2 %v878_v3  ;;  %v1339_v27 = vld [vmem:[%s1909_s3 + $0xe0] sm:$0xff]  ;;  %v1338_v30 = vld [vmem:[%s1909_s3 + $0xd8] sm:$0xff]  ;;  %v1328_v32 = vld [vmem:[%s1909_s3 + $0x88] sm:$0xff] }
  0x42   :  { %520 = vmatpush.bf16.msrb.mxu3 %v1006_v4  ;;  %v86_v29 = vld [vmem:[%s1908_s2] sm:$0xf]  ;;  %v1337_v34 = vld [vmem:[%s1909_s3 + $0xd0] sm:$0xff]  ;;  %v1336_v40 = vld [vmem:[%s1909_s3 + $0xc8] sm:$0xff] }
  0x43   :  { %482 = vmatmul.bf16.vlgmr.msrb.gmra.mxu0 %v1651_v58  ;;  %v88_v31 = vperm.slane %v86_v29, 0  ;;  %v89_v37 = vperm.slane %v86_v29, 1  ;;  %v1327_v38 = vld [vmem:[%s1909_s3 + $0x80] sm:$0xff]  ;;  %v90_v54 = vperm.slane %v86_v29, 2  ;;  %v91_v61 = vperm.slane %v86_v29, 3 }
  0x44   :  { %794 = vmatpush.bf16.msra.mxu0 %v1318_v5  ;;  %495 = vmatmul.bf16.vlgmr.msrb.gmra.mxu1 %v1656_v60  ;;  %v1335_v48 = vld [vmem:[%s1909_s3 + $0xc0] sm:$0xff] }
  0x45   :  { %807 = vmatpush.bf16.msra.mxu1 %v1326_v6  ;;  %508 = vmatmul.bf16.vlgmr.msrb.gmra.mxu2 %v1651_v58  ;;  %v1323_v58 = vld [vmem:[%s1909_s3 + $0x60] sm:$0xff] }
  0x46   :  { %521 = vmatmul.bf16.vlgmr.msrb.gmra.mxu3 %v1656_v60  ;;  %820 = vmatpush.bf16.msra.mxu2 %v1334_v7  ;;  %v1314_v60 = vld [vmem:[%s1909_s3 + $0x18] sm:$0xff] }
  0x47   :  { %833 = vmatpush.bf16.msra.mxu3 %v1342_v19 }
  0x48   :  { %795 = vmatpush.bf16.msra.mxu0 %v1317_v8 }
  0x49   :  { %808 = vmatpush.bf16.msra.mxu1 %v1325_v9 }
  0x4a   :  { %821 = vmatpush.bf16.msra.mxu2 %v1333_v16 }
  0x4b   :  { %834 = vmatpush.bf16.msra.mxu3 %v1341_v23 }
  0x4c   :  { %796 = vmatpush.bf16.msra.mxu0 %v1316_v10 }
  0x4d   :  { %809 = vmatpush.bf16.msra.mxu1 %v1324_v11 }
  0x4e   :  { %822 = vmatpush.bf16.msra.mxu2 %v1332_v20 }
  0x4f   :  { %835 = vmatpush.bf16.msra.mxu3 %v1340_v25 }
  0x50   :  { %797 = vmatpush.bf16.msra.mxu0 %v1315_v12 }
  0x51   :  { %810 = vmatpush.bf16.msra.mxu1 %v1323_v58 }
  0x52   :  { %823 = vmatpush.bf16.msra.mxu2 %v1331_v24 }
  0x53   :  { %836 = vmatpush.bf16.msra.mxu3 %v1339_v27 }
  0x54   :  { %798 = vmatpush.bf16.msra.mxu0 %v1314_v60  ;;  %v1344_v60 = vld [vmem:[%s1910_s4] ss:$0 sm:$0xff] }
  0x55   :  { %811 = vmatpush.bf16.msra.mxu1 %v1322_v13 }
  0x56   :  { %824 = vmatpush.bf16.msra.mxu2 %v1330_v26 }
  0x57   :  { %837 = vmatpush.bf16.msra.mxu3 %v1338_v30 }
  0x58   :  { %799 = vmatpush.bf16.msra.mxu0 %v1313_v14 }
  0x59   :  { %812 = vmatpush.bf16.msra.mxu1 %v1321_v15 }
  0x5a   :  { %825 = vmatpush.bf16.msra.mxu2 %v1329_v28 }
  0x5b   :  { %838 = vmatpush.bf16.msra.mxu3 %v1337_v34 }
  0x5c   :  { %800 = vmatpush.bf16.msra.mxu0 %v1312_v17 }
  0x5d   :  { %813 = vmatpush.bf16.msra.mxu1 %v1320_v18 }
  0x5e   :  { %826 = vmatpush.bf16.msra.mxu2 %v1328_v32 }
  0x5f   :  { %839 = vmatpush.bf16.msra.mxu3 %v1336_v40 }
  0x60   :  { %801 = vmatpush.bf16.msra.mxu0 %v1311_v21 }
  0x61   :  { %814 = vmatpush.bf16.msra.mxu1 %v1319_v22 }
  0x62   :  { %827 = vmatpush.bf16.msra.mxu2 %v1327_v38 }
  0x63   :  { %840 = vmatpush.bf16.msra.mxu3 %v1335_v48 }
  0xa0   :  { %v431_v33 = vpop.f32.mrf.mxu0 }
  0xa1   :  { %v432_v35 = vadd.f32 %v431_v33, %v88_v31 }
  0xa3   :  { %v444_v36 = vpop.f32.mrf.mxu1 }
  0xa4   :  { %v445_v39 = vadd.f32 %v444_v36, %v432_v35 }
  0xa6   :  { %v526_v42 = vmax.f32 %v445_v39, 0.0 }
  0xa7   :  { %v457_v41 = vpop.f32.mrf.mxu2 }
  0xa8   :  { %v458_v43 = vadd.f32 %v457_v41, %v89_v37  ;;  %v530_v45 = vpack.c.bf16 %v526_v42, %v526_v42  ;;  %v433_v47 = vpop.f32.mrf.mxu0 }
  0xaa   :  { %v470_v44 = vpop.f32.mrf.mxu3  ;;  %802 = vmatmul.bf16.vlgmr.msra.gmra.mxu0 %v530_v45 }
  0xab   :  { %v471_v46 = vadd.f32 %v470_v44, %v458_v43  ;;  %v446_v49 = vpop.f32.mrf.mxu1 }
  0xad   :  { %v527_v50 = vmax.f32 %v471_v46, 0.0 }
  0xaf   :  { %v531_v51 = vpack.c.bf16 %v527_v50, %v527_v50  ;;  %v459_v52 = vpop.f32.mrf.mxu2 }
  0xb1   :  { %815 = vmatmul.bf16.vlgmr.msra.gmra.mxu1 %v531_v51 }
  0xb2   :  { %v472_v53 = vpop.f32.mrf.mxu3 }
  0xc0   :  { %v483_v55 = vpop.f32.mrf.mxu0 }
  0xc1   :  { %v484_v56 = vadd.f32 %v483_v55, %v90_v54  ;;  %v496_v57 = vpop.f32.mrf.mxu1 }
  0xc3   :  { %v497_v59 = vadd.f32 %v496_v57, %v484_v56 }
  0xc5   :  { %v528_v62 = vmax.f32 %v497_v59, 0.0 }
  0xc7   :  { %v532_v63 = vpack.c.bf16 %v528_v62, %v528_v62 }
  0xc8   :  { %v509_v0 = vpop.f32.mrf.mxu2  ;;  %v485_v3 = vpop.f32.mrf.mxu0 }
  0xc9   :  { %v510_v1 = vadd.f32 %v509_v0, %v91_v61  ;;  %v522_v2 = vpop.f32.mrf.mxu3  ;;  %v498_v4 = vpop.f32.mrf.mxu1  ;;  %828 = vmatmul.bf16.vlgmr.msra.gmra.mxu2 %v532_v63 }
  0xcb   :  { %v523_v5 = vadd.f32 %v522_v2, %v510_v1 }
  0xcd   :  { %v529_v6 = vmax.f32 %v523_v5, 0.0 }
  0xcf   :  { %v533_v7 = vpack.c.bf16 %v529_v6, %v529_v6 }
  0xd0   :  { %v511_v8 = vpop.f32.mrf.mxu2 }
  0xd1   :  { %v524_v9 = vpop.f32.mrf.mxu3  ;;  %841 = vmatmul.bf16.vlgmr.msra.gmra.mxu3 %v533_v7 }
 0x127   :  { %v803_v10 = vpop.f32.mrf.mxu0 }
 0x128   :  { %v804_v13 = vadd.f32 %v1344_v60, %v803_v10 }
 0x12e   :  { %v816_v11 = vpop.f32.mrf.mxu1 }
 0x12f   :  { %v805_v12 = vpop.f32.mrf.mxu0  ;;  %v817_v15 = vadd.f32 %v816_v11, %v804_v13 }
 0x136   :  { %v818_v58 = vpop.f32.mrf.mxu1 }
 0x14c   :  { %v829_v14 = vpop.f32.mrf.mxu2 }
 0x14d   :  { %v830_v16 = vadd.f32 %v829_v14, %v817_v15 }
 0x154   :  { %v842_v17 = vpop.f32.mrf.mxu3  ;;  %v831_v19 = vpop.f32.mrf.mxu2 }
 0x155   :  { %v843_v18 = vadd.f32 %v842_v17, %v830_v16 }
 0x157   :  { %846 = vst [vmem:[#allocation2] sm:$0x3] %v843_v18 }
 0x158   :  { %857 = dma.vmem_to_hbm [thread:$0]  %s853_s8, 32, %s855_s11, [#allocation3]  }
 0x15c   :  { %v844_v20 = vpop.f32.mrf.mxu3 }
 0x15d   :  { %1369 = dma.done.wait [#allocation3], 32  }
 0x15e   :  { %1370 = vsyncadd [#allocation3], 4294967264 }
 0x15f   :  { %862 = vsyncpa [#allocation3], 1 }

</bundles_post_ra>
